<compile_context>
chip_gen: v5e
topology: v5e:2x2
jax: 0.10.0
libtpu: 0.0.40
codegen_flags: <defaults>
</compile_context>

<pallas_src>
import math
import functools

import jax
import jax.numpy as jnp
from jax import lax
from jax.experimental import pallas as pl
from jax.experimental.pallas import tpu as pltpu


_MXU_DTYPE = jnp.bfloat16          # MXU operand dtype for in_proj / out_proj (f32 accumulation)
_VMEM_LIMIT = 48 * 1024 * 1024     # fits v7x's 64 MiB VMEM; well under v5e/v6e's 128 MiB


# ----------------------------- Pallas kernels ------------------------------------

def _hyena_filter_kernel(z_ref, t_ref, w1_ref, b1_ref, freq_ref, w2_ref, b2_ref,
                         w3_ref, b3_ref, wo_ref, deltas_ref, k_ref, *, shift):
    # Implicit filter MLP (Linear + Sin stack) + exponential modulation -> k (L, D).
    # Kept f32: its FLOPs (L*H*H) are negligible next to the projections / long conv,
    # and k's accuracy matters since it feeds an L-term reduction.
    z = z_ref[...]                                                     # (L, 3)
    w1 = w1_ref[...]                                                   # (3, H)
    # First Linear has K=3: explicit broadcast-sum instead of a tiny MXU matmul.
    h = (z[:, 0:1] * w1[0:1, :] + z[:, 1:2] * w1[1:2, :] + z[:, 2:3] * w1[2:3, :]
         + b1_ref[...])
    freq = freq_ref[...]                                               # (1, H), shared Sin module
    h = jnp.sin(freq * h)
    h = jnp.dot(h, w2_ref[...], preferred_element_type=jnp.float32) + b2_ref[...]
    h = jnp.sin(freq * h)
    h = jnp.dot(h, w3_ref[...], preferred_element_type=jnp.float32) + b3_ref[...]
    h = jnp.sin(freq * h)
    h = jnp.dot(h, wo_ref[...], preferred_element_type=jnp.float32)    # (L, D), no bias
    decay = jnp.exp(-t_ref[...] * jnp.abs(deltas_ref[...]))            # ExponentialModulation
    k_ref[...] = (h * (decay + shift)).astype(k_ref.dtype)


def _hyena_fused_kernel(u_ref, w_in_ref, b_in_ref, w_sf_ref, b_sf_ref,
                        k_ref, fb_ref, w_out_ref, b_out_ref,
                        o_ref, xpad_ref, vgpad_ref, *, d_model):
    # Per-batch block (batch grid axis squeezed):
    #   u (L, D); w_in (D, 3D) bf16 pre-transposed; b_in (1, 3D); w_sf (3, 3D) taps; b_sf (1, 3D)
    #   k (L, D); fb (1, D); w_out (D, D) bf16; b_out (1, D); o out (L, D)
    #   xpad scratch (L+2, 3D) f32 (rows [0,2) = causal left pad)
    #   vgpad scratch (2L, D) f32 = [zeros(L); v*x1] (zero half == causal mask)
    D = d_model
    L = u_ref.shape[0]
    C = w_in_ref.shape[1]

    # --- in_proj on the MXU (bf16 operands, f32 accumulation) ---
    # PyTorch: x = in_proj(u)
    x = (jnp.dot(u_ref[...].astype(w_in_ref.dtype), w_in_ref[...],
                 preferred_element_type=jnp.float32) + b_in_ref[...])       # (L, 3D)

    # --- depthwise causal Conv1d(3, padding=2)(x.T)[..., :L] ---
    #   uc[t] = w_sf[2]*x[t] + w_sf[1]*x[t-1] + w_sf[0]*x[t-2] + b_sf
    # Vectorized as 3 shifted whole-block VPU FMAs against a left-zero-padded scratch.
    xpad_ref[0:2, :] = jnp.zeros((2, C), jnp.float32)
    xpad_ref[2:L + 2, :] = x
    w_sf = w_sf_ref[...]
    uc = (xpad_ref[2:L + 2, :] * w_sf[2:3, :]
          + xpad_ref[1:L + 1, :] * w_sf[1:2, :]
          + xpad_ref[0:L, :] * w_sf[0:1, :]
          + b_sf_ref[...])                                                  # (L, 3D)

    # Channel split [x0 | x1 | v] happens in VMEM/vregs -> no separate HBM round trip.
    x0 = uc[:, 0:D]
    x1 = uc[:, D:2 * D]
    v = uc[:, 2 * D:3 * D]

    # --- fftconv equivalent (zero-pad to 2L, keep first L == causal linear conv) + gates ---
    #   vg   = v * x1
    #   y[t] = fb * vg[t] + sum_{tau<=t} k[tau] * vg[t-tau]
    #   o    = (y * x0) @ w_out + b_out
    vg = v * x1                                                             # (L, D)
    vgpad_ref[0:L, :] = jnp.zeros((L, D), jnp.float32)
    vgpad_ref[L:2 * L, :] = vg

    # O(L) lag loop: one whole-block VPU FMA per lag tau; rows t < tau read the zero pad.
    # Accumulator is a fori_loop carry (register-resident for small tiles; the compiler
    # spills to VMEM when it doesn't fit) -> no acc load/store pair per lag.
    def lag_body(tau, acc):
        shifted = vgpad_ref[pl.ds(L - tau, L), :]                           # vg[t - tau] (or 0)
        return acc + shifted * k_ref[pl.ds(tau, 1), :]

    acc0 = vg * fb_ref[...]                                                 # skip (u * bias)
    acc = lax.fori_loop(0, L, lag_body, acc0, unroll=True if L <= 256 else 8)

    y = acc * x0                                                            # output gate
    o_ref[...] = (jnp.dot(y.astype(w_out_ref.dtype), w_out_ref[...],        # out_proj epilogue
                          preferred_element_type=jnp.float32)
                  + b_out_ref[...]).astype(o_ref.dtype)


# ----------------------------- pallas_call wrappers -------------------------------

def _hyena_filter(kp, L, shift):
    D = kp["wo"].shape[1]
    vm = pl.BlockSpec(memory_space=pltpu.MemorySpace.VMEM)     # tiny (L, H) problem: whole in VMEM
    return pl.pallas_call(
        functools.partial(_hyena_filter_kernel, shift=shift),
        out_shape=jax.ShapeDtypeStruct((L, D), jnp.float32),
        in_specs=[vm] * 11,
        out_specs=vm,
    )(kp["z"][:L], kp["t"][:L], kp["w1"], kp["b1"], kp["freq"],
      kp["w2"], kp["b2"], kp["w3"], kp["b3"], kp["wo"], kp["deltas"])


def _hyena_fused(u, k, kp, d_model):
    B, L, D = u.shape
    C = kp["w_in"].shape[1]                    # inner = d_model * (order + 1)
    grid_spec = pltpu.PrefetchScalarGridSpec(
        num_scalar_prefetch=0,
        grid=(B,),
        in_specs=[
            pl.BlockSpec((None, L, D), lambda b: (b, 0, 0)),   # one batch row per grid step
            pl.BlockSpec((D, C), lambda b: (0, 0)),            # weights: VMEM-resident blocks
            pl.BlockSpec((1, C), lambda b: (0, 0)),            # (same block index every step
            pl.BlockSpec((3, C), lambda b: (0, 0)),            #  -> no re-DMA across the grid)
            pl.BlockSpec((1, C), lambda b: (0, 0)),
            pl.BlockSpec((L, D), lambda b: (0, 0)),            # k: resident long filter
            pl.BlockSpec((1, D), lambda b: (0, 0)),            # filter skip bias
            pl.BlockSpec((D, D), lambda b: (0, 0)),            # out_proj weight (bf16)
            pl.BlockSpec((1, D), lambda b: (0, 0)),            # out_proj bias
        ],
        out_specs=pl.BlockSpec((None, L, D), lambda b: (b, 0, 0)),
        scratch_shapes=[pltpu.VMEM((L + 2, C), jnp.float32),   # left-padded in_proj activations
                        pltpu.VMEM((2 * L, D), jnp.float32)],  # zero-padded vg for the lag loop
    )
    return pl.pallas_call(
        functools.partial(_hyena_fused_kernel, d_model=D),
        out_shape=jax.ShapeDtypeStruct((B, L, D), jnp.float32),
        grid_spec=grid_spec,
        compiler_params=pltpu.CompilerParams(
            dimension_semantics=("parallel",),                 # batch axis -> megacore on v7x
            vmem_limit_bytes=_VMEM_LIMIT),
    )(u, kp["w_in"], kp["b_in"], kp["w_sf"], kp["b_sf"],
      k, kp["f_bias"], kp["w_out"], kp["b_out"])


# ----------------------------- parameters (deterministic) -------------------------

def init_params(key, d_model, l_max, order, filter_order, emb_dim=3):
    inner = d_model * (order + 1)
    d_filt = d_model * (order - 1)
    ks = list(jax.random.split(key, 16))

    def lin(k, fan_in, shape):
        bound = 1.0 / math.sqrt(fan_in)
        return jax.random.uniform(k, shape, jnp.float32, -bound, bound)

    p = {
        # HyenaOperator projections (torch Linear weight layout: (out, in))
        "w_in": lin(ks[0], d_model, (inner, d_model)),
        "b_in": lin(ks[1], d_model, (inner,)),
        "w_out": lin(ks[2], d_model, (d_model, d_model)),
        "b_out": lin(ks[3], d_model, (d_model,)),
        # short_filter: Conv1d(inner, inner, 3, groups=inner) weight (C,1,3) squeezed -> (C,3)
        "w_sf": lin(ks[4], 3, (inner, 3)),
        "b_sf": lin(ks[5], 3, (inner,)),
        # HyenaFilter implicit MLP: Linear(3,H), (Linear(H,H))x2, Linear(H, d_filt, bias=False)
        "w1": lin(ks[6], emb_dim, (filter_order, emb_dim)),
        "b1": lin(ks[7], emb_dim, (filter_order,)),
        "w2": lin(ks[8], filter_order, (filter_order, filter_order)),
        "b2": lin(ks[9], filter_order, (filter_order,)),
        "w3": lin(ks[10], filter_order, (filter_order, filter_order)),
        "b3": lin(ks[11], filter_order, (filter_order,)),
        "wo": lin(ks[12], filter_order, (d_filt, filter_order)),
        # Sin activation (shared module, w=1 default in HyenaFilter)
        "freq": jnp.ones((1, filter_order), jnp.float32),
        # HyenaFilter.bias = torch.randn(d_filt)
        "f_bias": jax.random.normal(ks[13], (d_filt,), jnp.float32),
    }
    # ExponentialModulation deltas buffer
    max_decay = math.log(0.01) / 0.3
    min_decay = math.log(0.01) / 1.5
    p["deltas"] = jnp.linspace(min_decay, max_decay, d_filt).astype(jnp.float32)
    # PositionalEmbedding buffers (deterministic init formula from the module)
    t_lin = jnp.linspace(0.0, 1.0, l_max, dtype=jnp.float32)[:, None]          # (l_max, 1)
    bands = (emb_dim - 1) // 2
    t_r = jnp.linspace(0.0, float(l_max - 1), l_max, dtype=jnp.float32)[:, None]
    w_ang = 2.0 * math.pi * t_r / l_max
    f = jnp.linspace(1e-4, float(bands - 1), bands, dtype=jnp.float32)[None, :]
    theta = f * w_ang
    # z = cat([t, real(exp(-i f w)), imag(exp(-i f w))]) = [t, cos, -sin]
    p["z"] = jnp.concatenate([t_lin, jnp.cos(theta), -jnp.sin(theta)], axis=-1)  # (l_max, emb_dim)
    p["t"] = t_lin
    return p


def prepare_kernel_params(p, mxu_dtype=_MXU_DTYPE):
    """One-time layout prep for the kernels: pre-transpose every weight to (in, out),
    pre-broadcast biases to (1, N), and cast the dense-projection weights to the MXU
    operand dtype (bf16 operands, f32 accumulation)."""
    return {
        "w_in": p["w_in"].T.astype(mxu_dtype),      # (D, 3D)
        "b_in": p["b_in"][None, :],
        "w_out": p["w_out"].T.astype(mxu_dtype),    # (D, D)
        "b_out": p["b_out"][None, :],
        "w_sf": p["w_sf"].T,                        # (3, 3D), tap index first
        "b_sf": p["b_sf"][None, :],
        "w1": p["w1"].T, "b1": p["b1"][None, :],
        "w2": p["w2"].T, "b2": p["b2"][None, :],
        "w3": p["w3"].T, "b3": p["b3"][None, :],
        "wo": p["wo"].T,
        "freq": p["freq"],
        "deltas": p["deltas"][None, :],
        "f_bias": p["f_bias"][None, :],
        "z": p["z"],
        "t": p["t"],
    }


# ----------------------------- Hyena forward (Pallas) -----------------------------

def hyena_forward(u, kp, *, order=2, shift=0.05):
    # TODO(synk): only order=2 (the module default) is implemented; order>2 would run the
    #             long-conv/gate stage once per extra filter group before the out_proj epilogue.
    assert order == 2
    B, L, D = u.shape
    assert L <= kp["z"].shape[0]

    k = _hyena_filter(kp, L, shift)               # (L, D) implicit long filter (runs once)
    y = _hyena_fused(u, k, kp, D)                 # (B, L, D) in_proj+conv+gates+long-conv+out_proj
    return y


# ----------------------------- pure-JAX reference (mirrors the torch code) --------

def _fftconv_ref(u, k, bias):
    seqlen = u.shape[-1]
    fft_size = 2 * seqlen
    k_f = jnp.fft.rfft(k, n=fft_size) / fft_size
    u_f = jnp.fft.rfft(u, n=fft_size)
    y = jnp.fft.irfft(u_f * k_f, n=fft_size, norm="forward")[..., :seqlen]
    return y + u * bias[..., None]


def ref_forward(u, p, *, shift=0.05):
    B, L, D = u.shape
    x = u @ p["w_in"].T + p["b_in"]
    xc = jnp.transpose(x, (0, 2, 1))                       # (B, 3D, L)
    xp = jnp.pad(xc, ((0, 0), (0, 0), (2, 2)))
    uc = sum(p["w_sf"][:, j][None, :, None] * xp[:, :, j:j + L + 2] for j in range(3))
    uc = (uc + p["b_sf"][None, :, None])[..., :L]
    x0, x1, v = uc[:, :D], uc[:, D:2 * D], uc[:, 2 * D:]
    z, t = p["z"][:L], p["t"][:L]
    h = jnp.sin(p["freq"] * (z @ p["w1"].T + p["b1"]))
    h = jnp.sin(p["freq"] * (h @ p["w2"].T + p["b2"]))
    h = jnp.sin(p["freq"] * (h @ p["w3"].T + p["b3"]))
    h = h @ p["wo"].T
    k = h * (jnp.exp(-t * jnp.abs(p["deltas"][None, :])) + shift)   # (L, D)
    v = v * x1
    v = _fftconv_ref(v, k.T, p["f_bias"])
    y = jnp.transpose(v * x0, (0, 2, 1))
    return y @ p["w_out"].T + p["b_out"]


# ----------------------------- main ------------------------------------------------

if __name__ == "__main__":
    d_model, l_max, order, filter_order = 8, 16, 2, 64
    B, L = 2, 16

    key = jax.random.PRNGKey(0)
    pkey, ukey = jax.random.split(key)
    params = init_params(pkey, d_model, l_max, order, filter_order)
    kparams = prepare_kernel_params(params)
    u = jax.random.normal(ukey, (B, L, d_model), jnp.float32)

    fwd = jax.jit(hyena_forward)
    out = jax.block_until_ready(fwd(u, kparams))

    ref = jax.block_until_ready(ref_forward(u, params))
    assert out.shape == (B, L, d_model)
    assert bool(jnp.all(jnp.isfinite(out)))
    # Tolerance accounts for bf16 MXU operands in the kernels (and XLA default-precision
    # matmuls in the reference); a real indexing/conv bug produces O(0.1-1) errors.
    max_err = float(jnp.max(jnp.abs(out - ref)))
    if not jnp.allclose(out, ref, rtol=1e-2, atol=1e-2):
        raise AssertionError(f"mismatch vs reference, max abs err = {max_err}")
    print("KERNEL_OK")
</pallas_src>

<mosaic_0001>
module attributes {stable_mosaic.version = 11 : i64} {
  func.func @_hyena_filter_kernel(%arg0: memref<16x3xf32, #tpu.memory_space<vmem>>, %arg1: memref<16x1xf32, #tpu.memory_space<vmem>>, %arg2: memref<3x64xf32, #tpu.memory_space<vmem>>, %arg3: memref<1x64xf32, #tpu.memory_space<vmem>>, %arg4: memref<1x64xf32, #tpu.memory_space<vmem>>, %arg5: memref<64x64xf32, #tpu.memory_space<vmem>>, %arg6: memref<1x64xf32, #tpu.memory_space<vmem>>, %arg7: memref<64x64xf32, #tpu.memory_space<vmem>>, %arg8: memref<1x64xf32, #tpu.memory_space<vmem>>, %arg9: memref<64x8xf32, #tpu.memory_space<vmem>>, %arg10: memref<1x8xf32, #tpu.memory_space<vmem>>, %arg11: memref<16x8xf32, #tpu.memory_space<vmem>>) attributes {dimension_semantics = [], scalar_prefetch = 0 : i64, scratch_operands = 0 : i64, tpu.core_type = #tpu.core_type<tc>} {
    %c0 = arith.constant 0 : index
    %c0_0 = arith.constant 0 : index
    %0 = vector.load %arg0[%c0, %c0_0] : memref<16x3xf32, #tpu.memory_space<vmem>>, vector<16x3xf32>
    %c0_1 = arith.constant 0 : index
    %c0_2 = arith.constant 0 : index
    %1 = vector.load %arg2[%c0_1, %c0_2] : memref<3x64xf32, #tpu.memory_space<vmem>>, vector<3x64xf32>
    %2 = vector.extract_strided_slice %0 {offsets = [0, 0], sizes = [16, 1], strides = [1, 1]} : vector<16x3xf32> to vector<16x1xf32>
    %3 = vector.extract_strided_slice %1 {offsets = [0, 0], sizes = [1, 64], strides = [1, 1]} : vector<3x64xf32> to vector<1x64xf32>
    %4 = vector.broadcast %2 : vector<16x1xf32> to vector<16x64xf32>
    %5 = vector.broadcast %3 : vector<1x64xf32> to vector<16x64xf32>
    %6 = arith.mulf %4, %5 : vector<16x64xf32>
    %7 = vector.extract_strided_slice %0 {offsets = [0, 1], sizes = [16, 1], strides = [1, 1]} : vector<16x3xf32> to vector<16x1xf32>
    %8 = vector.extract_strided_slice %1 {offsets = [1, 0], sizes = [1, 64], strides = [1, 1]} : vector<3x64xf32> to vector<1x64xf32>
    %9 = vector.broadcast %7 : vector<16x1xf32> to vector<16x64xf32>
    %10 = vector.broadcast %8 : vector<1x64xf32> to vector<16x64xf32>
    %11 = arith.mulf %9, %10 : vector<16x64xf32>
    %12 = arith.addf %6, %11 : vector<16x64xf32>
    %13 = vector.extract_strided_slice %0 {offsets = [0, 2], sizes = [16, 1], strides = [1, 1]} : vector<16x3xf32> to vector<16x1xf32>
    %14 = vector.extract_strided_slice %1 {offsets = [2, 0], sizes = [1, 64], strides = [1, 1]} : vector<3x64xf32> to vector<1x64xf32>
    %15 = vector.broadcast %13 : vector<16x1xf32> to vector<16x64xf32>
    %16 = vector.broadcast %14 : vector<1x64xf32> to vector<16x64xf32>
    %17 = arith.mulf %15, %16 : vector<16x64xf32>
    %18 = arith.addf %12, %17 : vector<16x64xf32>
    %c0_3 = arith.constant 0 : index
    %c0_4 = arith.constant 0 : index
    %19 = vector.load %arg3[%c0_3, %c0_4] : memref<1x64xf32, #tpu.memory_space<vmem>>, vector<1x64xf32>
    %20 = vector.broadcast %19 : vector<1x64xf32> to vector<16x64xf32>
    %21 = arith.addf %18, %20 : vector<16x64xf32>
    %c0_5 = arith.constant 0 : index
    %c0_6 = arith.constant 0 : index
    %22 = vector.load %arg4[%c0_5, %c0_6] : memref<1x64xf32, #tpu.memory_space<vmem>>, vector<1x64xf32>
    %23 = vector.broadcast %22 : vector<1x64xf32> to vector<16x64xf32>
    %24 = arith.mulf %23, %21 : vector<16x64xf32>
    %25 = math.sin %24 : vector<16x64xf32>
    %c0_7 = arith.constant 0 : index
    %c0_8 = arith.constant 0 : index
    %26 = vector.load %arg5[%c0_7, %c0_8] : memref<64x64xf32, #tpu.memory_space<vmem>>, vector<64x64xf32>
    %cst = arith.constant dense<0.000000e+00> : vector<16x64xf32>
    %27 = tpu.matmul %25, %26, %cst {dimension_numbers = #tpu.dot_dimension_numbers<[1], [0], [0], [1], [0, 0, 1, 1], [], []>} : vector<16x64xf32>, vector<64x64xf32>, vector<16x64xf32> -> vector<16x64xf32>
    %c0_9 = arith.constant 0 : index
    %c0_10 = arith.constant 0 : index
    %28 = vector.load %arg6[%c0_9, %c0_10] : memref<1x64xf32, #tpu.memory_space<vmem>>, vector<1x64xf32>
    %29 = vector.broadcast %28 : vector<1x64xf32> to vector<16x64xf32>
    %30 = arith.addf %27, %29 : vector<16x64xf32>
    %31 = vector.broadcast %22 : vector<1x64xf32> to vector<16x64xf32>
    %32 = arith.mulf %31, %30 : vector<16x64xf32>
    %33 = math.sin %32 : vector<16x64xf32>
    %c0_11 = arith.constant 0 : index
    %c0_12 = arith.constant 0 : index
    %34 = vector.load %arg7[%c0_11, %c0_12] : memref<64x64xf32, #tpu.memory_space<vmem>>, vector<64x64xf32>
    %cst_13 = arith.constant dense<0.000000e+00> : vector<16x64xf32>
    %35 = tpu.matmul %33, %34, %cst_13 {dimension_numbers = #tpu.dot_dimension_numbers<[1], [0], [0], [1], [0, 0, 1, 1], [], []>} : vector<16x64xf32>, vector<64x64xf32>, vector<16x64xf32> -> vector<16x64xf32>
    %c0_14 = arith.constant 0 : index
    %c0_15 = arith.constant 0 : index
    %36 = vector.load %arg8[%c0_14, %c0_15] : memref<1x64xf32, #tpu.memory_space<vmem>>, vector<1x64xf32>
    %37 = vector.broadcast %36 : vector<1x64xf32> to vector<16x64xf32>
    %38 = arith.addf %35, %37 : vector<16x64xf32>
    %39 = vector.broadcast %22 : vector<1x64xf32> to vector<16x64xf32>
    %40 = arith.mulf %39, %38 : vector<16x64xf32>
    %41 = math.sin %40 : vector<16x64xf32>
    %c0_16 = arith.constant 0 : index
    %c0_17 = arith.constant 0 : index
    %42 = vector.load %arg9[%c0_16, %c0_17] : memref<64x8xf32, #tpu.memory_space<vmem>>, vector<64x8xf32>
    %cst_18 = arith.constant dense<0.000000e+00> : vector<16x8xf32>
    %43 = tpu.matmul %41, %42, %cst_18 {dimension_numbers = #tpu.dot_dimension_numbers<[1], [0], [0], [1], [0, 0, 1, 1], [], []>} : vector<16x64xf32>, vector<64x8xf32>, vector<16x8xf32> -> vector<16x8xf32>
    %c0_19 = arith.constant 0 : index
    %c0_20 = arith.constant 0 : index
    %44 = vector.load %arg1[%c0_19, %c0_20] : memref<16x1xf32, #tpu.memory_space<vmem>>, vector<16x1xf32>
    %cst_21 = arith.constant 0.000000e+00 : f32
    %45 = vector.broadcast %cst_21 : f32 to vector<16x1xf32>
    %46 = arith.subf %45, %44 : vector<16x1xf32>
    %c0_22 = arith.constant 0 : index
    %c0_23 = arith.constant 0 : index
    %47 = vector.load %arg10[%c0_22, %c0_23] : memref<1x8xf32, #tpu.memory_space<vmem>>, vector<1x8xf32>
    %48 = math.absf %47 : vector<1x8xf32>
    %49 = vector.broadcast %46 : vector<16x1xf32> to vector<16x8xf32>
    %50 = vector.broadcast %48 : vector<1x8xf32> to vector<16x8xf32>
    %51 = arith.mulf %49, %50 : vector<16x8xf32>
    %52 = math.exp %51 : vector<16x8xf32>
    %cst_24 = arith.constant 5.000000e-02 : f32
    %53 = vector.broadcast %cst_24 : f32 to vector<16x8xf32>
    %54 = arith.addf %52, %53 : vector<16x8xf32>
    %55 = arith.mulf %43, %54 : vector<16x8xf32>
    %c0_25 = arith.constant 0 : index
    %c0_26 = arith.constant 0 : index
    %56 = vector.load %arg11[%c0_25, %c0_26] : memref<16x8xf32, #tpu.memory_space<vmem>>, vector<16x8xf32>
    tpu.vector_store %arg11[%c0_25, %c0_26], %55 {strides = array<i32>} : memref<16x8xf32, #tpu.memory_space<vmem>>, vector<16x8xf32>,
    return
  }
}

module attributes {stable_mosaic.version = 11 : i64} {
  func.func @_hyena_fused_kernel(%arg0: i32, %arg1: memref<1x16x8xf32, #tpu.memory_space<vmem>>, %arg2: memref<8x24xbf16, #tpu.memory_space<vmem>>, %arg3: memref<1x24xf32, #tpu.memory_space<vmem>>, %arg4: memref<3x24xf32, #tpu.memory_space<vmem>>, %arg5: memref<1x24xf32, #tpu.memory_space<vmem>>, %arg6: memref<16x8xf32, #tpu.memory_space<vmem>>, %arg7: memref<1x8xf32, #tpu.memory_space<vmem>>, %arg8: memref<8x8xbf16, #tpu.memory_space<vmem>>, %arg9: memref<1x8xf32, #tpu.memory_space<vmem>>, %arg10: memref<1x16x8xf32, #tpu.memory_space<vmem>>, %arg11: memref<18x24xf32, #tpu.memory_space<vmem>>, %arg12: memref<32x8xf32, #tpu.memory_space<vmem>>) attributes {dimension_semantics = [#tpu.dimension_semantics<parallel>], iteration_bounds = array<i64: 2>, scalar_prefetch = 0 : i64, scratch_operands = 2 : i64, tpu.core_type = #tpu.core_type<tc>, window_params = [{transform_indices = @transform_0, window_bounds = array<i64: 1, 16, 8>}, {pipeline_mode = #tpu.pipeline_mode<synchronous>, transform_indices = @transform_1, window_bounds = array<i64: 8, 24>}, {pipeline_mode = #tpu.pipeline_mode<synchronous>, transform_indices = @transform_2, window_bounds = array<i64: 1, 24>}, {pipeline_mode = #tpu.pipeline_mode<synchronous>, transform_indices = @transform_3, window_bounds = array<i64: 3, 24>}, {pipeline_mode = #tpu.pipeline_mode<synchronous>, transform_indices = @transform_4, window_bounds = array<i64: 1, 24>}, {pipeline_mode = #tpu.pipeline_mode<synchronous>, transform_indices = @transform_5, window_bounds = array<i64: 16, 8>}, {pipeline_mode = #tpu.pipeline_mode<synchronous>, transform_indices = @transform_6, window_bounds = array<i64: 1, 8>}, {pipeline_mode = #tpu.pipeline_mode<synchronous>, transform_indices = @transform_7, window_bounds = array<i64: 8, 8>}, {pipeline_mode = #tpu.pipeline_mode<synchronous>, transform_indices = @transform_8, window_bounds = array<i64: 1, 8>}, {transform_indices = @transform_9, window_bounds = array<i64: 1, 16, 8>}]} {
    %c0 = arith.constant 0 : index
    %c0_0 = arith.constant 0 : index
    %c0_1 = arith.constant 0 : index
    %0 = vector.load %arg1[%c0, %c0_0, %c0_1] : memref<1x16x8xf32, #tpu.memory_space<vmem>>, vector<1x16x8xf32>
    %1 = vector.shape_cast %0 : vector<1x16x8xf32> to vector<16x8xf32>
    %2 = arith.truncf %1 : vector<16x8xf32> to vector<16x8xbf16>
    %c0_2 = arith.constant 0 : index
    %c0_3 = arith.constant 0 : index
    %3 = vector.load %arg2[%c0_2, %c0_3] : memref<8x24xbf16, #tpu.memory_space<vmem>>, vector<8x24xbf16>
    %cst = arith.constant dense<0.000000e+00> : vector<16x24xf32>
    %4 = tpu.matmul %2, %3, %cst {dimension_numbers = #tpu.dot_dimension_numbers<[1], [0], [0], [1], [0, 0, 1, 1], [], []>} : vector<16x8xbf16>, vector<8x24xbf16>, vector<16x24xf32> -> vector<16x24xf32>
    %c0_4 = arith.constant 0 : index
    %c0_5 = arith.constant 0 : index
    %5 = vector.load %arg3[%c0_4, %c0_5] : memref<1x24xf32, #tpu.memory_space<vmem>>, vector<1x24xf32>
    %6 = vector.broadcast %5 : vector<1x24xf32> to vector<16x24xf32>
    %7 = arith.addf %4, %6 : vector<16x24xf32>
    %cst_6 = arith.constant 0.000000e+00 : f32
    %8 = vector.broadcast %cst_6 : f32 to vector<2x24xf32>
    %c0_7 = arith.constant 0 : index
    %c0_8 = arith.constant 0 : index
    %9 = vector.load %arg11[%c0_7, %c0_8] : memref<18x24xf32, #tpu.memory_space<vmem>>, vector<2x24xf32>
    tpu.vector_store %arg11[%c0_7, %c0_8], %8 {strides = array<i32>} : memref<18x24xf32, #tpu.memory_space<vmem>>, vector<2x24xf32>,
    %c2 = arith.constant 2 : index
    %c0_9 = arith.constant 0 : index
    %10 = vector.load %arg11[%c2, %c0_9] : memref<18x24xf32, #tpu.memory_space<vmem>>, vector<16x24xf32>
    tpu.vector_store %arg11[%c2, %c0_9], %7 {strides = array<i32>} : memref<18x24xf32, #tpu.memory_space<vmem>>, vector<16x24xf32>,
    %c0_10 = arith.constant 0 : index
    %c0_11 = arith.constant 0 : index
    %11 = vector.load %arg4[%c0_10, %c0_11] : memref<3x24xf32, #tpu.memory_space<vmem>>, vector<3x24xf32>
    %c2_12 = arith.constant 2 : index
    %c0_13 = arith.constant 0 : index
    %12 = vector.load %arg11[%c2_12, %c0_13] : memref<18x24xf32, #tpu.memory_space<vmem>>, vector<16x24xf32>
    %13 = vector.extract_strided_slice %11 {offsets = [2, 0], sizes = [1, 24], strides = [1, 1]} : vector<3x24xf32> to vector<1x24xf32>
    %14 = vector.broadcast %13 : vector<1x24xf32> to vector<16x24xf32>
    %15 = arith.mulf %12, %14 : vector<16x24xf32>
    %c1 = arith.constant 1 : index
    %c0_14 = arith.constant 0 : index
    %16 = vector.load %arg11[%c1, %c0_14] : memref<18x24xf32, #tpu.memory_space<vmem>>, vector<16x24xf32>
    %17 = vector.extract_strided_slice %11 {offsets = [1, 0], sizes = [1, 24], strides = [1, 1]} : vector<3x24xf32> to vector<1x24xf32>
    %18 = vector.broadcast %17 : vector<1x24xf32> to vector<16x24xf32>
    %19 = arith.mulf %16, %18 : vector<16x24xf32>
    %20 = arith.addf %15, %19 : vector<16x24xf32>
    %c0_15 = arith.constant 0 : index
    %c0_16 = arith.constant 0 : index
    %21 = vector.load %arg11[%c0_15, %c0_16] : memref<18x24xf32, #tpu.memory_space<vmem>>, vector<16x24xf32>
    %22 = vector.extract_strided_slice %11 {offsets = [0, 0], sizes = [1, 24], strides = [1, 1]} : vector<3x24xf32> to vector<1x24xf32>
    %23 = vector.broadcast %22 : vector<1x24xf32> to vector<16x24xf32>
    %24 = arith.mulf %21, %23 : vector<16x24xf32>
    %25 = arith.addf %20, %24 : vector<16x24xf32>
    %c0_17 = arith.constant 0 : index
    %c0_18 = arith.constant 0 : index
    %26 = vector.load %arg5[%c0_17, %c0_18] : memref<1x24xf32, #tpu.memory_space<vmem>>, vector<1x24xf32>
    %27 = vector.broadcast %26 : vector<1x24xf32> to vector<16x24xf32>
    %28 = arith.addf %25, %27 : vector<16x24xf32>
    %29 = vector.extract_strided_slice %28 {offsets = [0, 0], sizes = [16, 8], strides = [1, 1]} : vector<16x24xf32> to vector<16x8xf32>
    %30 = vector.extract_strided_slice %28 {offsets = [0, 8], sizes = [16, 8], strides = [1, 1]} : vector<16x24xf32> to vector<16x8xf32>
    %31 = vector.extract_strided_slice %28 {offsets = [0, 16], sizes = [16, 8], strides = [1, 1]} : vector<16x24xf32> to vector<16x8xf32>
    %32 = arith.mulf %31, %30 : vector<16x8xf32>
    %cst_19 = arith.constant 0.000000e+00 : f32
    %33 = vector.broadcast %cst_19 : f32 to vector<16x8xf32>
    %c0_20 = arith.constant 0 : index
    %c0_21 = arith.constant 0 : index
    %34 = vector.load %arg12[%c0_20, %c0_21] : memref<32x8xf32, #tpu.memory_space<vmem>>, vector<16x8xf32>
    tpu.vector_store %arg12[%c0_20, %c0_21], %33 {strides = array<i32>} : memref<32x8xf32, #tpu.memory_space<vmem>>, vector<16x8xf32>,
    %c16 = arith.constant 16 : index
    %c0_22 = arith.constant 0 : index
    %35 = vector.load %arg12[%c16, %c0_22] : memref<32x8xf32, #tpu.memory_space<vmem>>, vector<16x8xf32>
    tpu.vector_store %arg12[%c16, %c0_22], %32 {strides = array<i32>} : memref<32x8xf32, #tpu.memory_space<vmem>>, vector<16x8xf32>,
    %c0_23 = arith.constant 0 : index
    %c0_24 = arith.constant 0 : index
    %36 = vector.load %arg7[%c0_23, %c0_24] : memref<1x8xf32, #tpu.memory_space<vmem>>, vector<1x8xf32>
    %37 = vector.broadcast %36 : vector<1x8xf32> to vector<16x8xf32>
    %38 = arith.mulf %32, %37 : vector<16x8xf32>
    %c0_i32 = arith.constant 0 : i32
    %c16_i32 = arith.constant 16 : i32
    %39 = arith.subi %c16_i32, %c0_i32 : i32
    %40 = arith.index_cast %39 : i32 to index
    %c0_25 = arith.constant 0 : index
    %41 = vector.load %arg12[%40, %c0_25] : memref<32x8xf32, #tpu.memory_space<vmem>>, vector<16x8xf32>
    %42 = arith.index_cast %c0_i32 : i32 to index
    %c0_26 = arith.constant 0 : index
    %43 = vector.load %arg6[%42, %c0_26] : memref<16x8xf32, #tpu.memory_space<vmem>>, vector<1x8xf32>
    %44 = vector.broadcast %43 : vector<1x8xf32> to vector<16x8xf32>
    %45 = arith.mulf %41, %44 : vector<16x8xf32>
    %46 = arith.addf %38, %45 : vector<16x8xf32>
    %c1_i32 = arith.constant 1 : i32
    %c16_i32_27 = arith.constant 16 : i32
    %47 = arith.subi %c16_i32_27, %c1_i32 : i32
    %48 = arith.index_cast %47 : i32 to index
    %c0_28 = arith.constant 0 : index
    %49 = vector.load %arg12[%48, %c0_28] : memref<32x8xf32, #tpu.memory_space<vmem>>, vector<16x8xf32>
    %50 = arith.index_cast %c1_i32 : i32 to index
    %c0_29 = arith.constant 0 : index
    %51 = vector.load %arg6[%50, %c0_29] : memref<16x8xf32, #tpu.memory_space<vmem>>, vector<1x8xf32>
    %52 = vector.broadcast %51 : vector<1x8xf32> to vector<16x8xf32>
    %53 = arith.mulf %49, %52 : vector<16x8xf32>
    %54 = arith.addf %46, %53 : vector<16x8xf32>
    %c2_i32 = arith.constant 2 : i32
    %c16_i32_30 = arith.constant 16 : i32
    %55 = arith.subi %c16_i32_30, %c2_i32 : i32
    %56 = arith.index_cast %55 : i32 to index
    %c0_31 = arith.constant 0 : index
    %57 = vector.load %arg12[%56, %c0_31] : memref<32x8xf32, #tpu.memory_space<vmem>>, vector<16x8xf32>
    %58 = arith.index_cast %c2_i32 : i32 to index
    %c0_32 = arith.constant 0 : index
    %59 = vector.load %arg6[%58, %c0_32] : memref<16x8xf32, #tpu.memory_space<vmem>>, vector<1x8xf32>
    %60 = vector.broadcast %59 : vector<1x8xf32> to vector<16x8xf32>
    %61 = arith.mulf %57, %60 : vector<16x8xf32>
    %62 = arith.addf %54, %61 : vector<16x8xf32>
    %c3_i32 = arith.constant 3 : i32
    %c16_i32_33 = arith.constant 16 : i32
    %63 = arith.subi %c16_i32_33, %c3_i32 : i32
    %64 = arith.index_cast %63 : i32 to index
    %c0_34 = arith.constant 0 : index
    %65 = vector.load %arg12[%64, %c0_34] : memref<32x8xf32, #tpu.memory_space<vmem>>, vector<16x8xf32>
    %66 = arith.index_cast %c3_i32 : i32 to index
    %c0_35 = arith.constant 0 : index
    %67 = vector.load %arg6[%66, %c0_35] : memref<16x8xf32, #tpu.memory_space<vmem>>, vector<1x8xf32>
    %68 = vector.broadcast %67 : vector<1x8xf32> to vector<16x8xf32>
    %69 = arith.mulf %65, %68 : vector<16x8xf32>
    %70 = arith.addf %62, %69 : vector<16x8xf32>
    %c4_i32 = arith.constant 4 : i32
    %c16_i32_36 = arith.constant 16 : i32
    %71 = arith.subi %c16_i32_36, %c4_i32 : i32
    %72 = arith.index_cast %71 : i32 to index
    %c0_37 = arith.constant 0 : index
    %73 = vector.load %arg12[%72, %c0_37] : memref<32x8xf32, #tpu.memory_space<vmem>>, vector<16x8xf32>
    %74 = arith.index_cast %c4_i32 : i32 to index
    %c0_38 = arith.constant 0 : index
    %75 = vector.load %arg6[%74, %c0_38] : memref<16x8xf32, #tpu.memory_space<vmem>>, vector<1x8xf32>
    %76 = vector.broadcast %75 : vector<1x8xf32> to vector<16x8xf32>
    %77 = arith.mulf %73, %76 : vector<16x8xf32>
    %78 = arith.addf %70, %77 : vector<16x8xf32>
    %c5_i32 = arith.constant 5 : i32
    %c16_i32_39 = arith.constant 16 : i32
    %79 = arith.subi %c16_i32_39, %c5_i32 : i32
    %80 = arith.index_cast %79 : i32 to index
    %c0_40 = arith.constant 0 : index
    %81 = vector.load %arg12[%80, %c0_40] : memref<32x8xf32, #tpu.memory_space<vmem>>, vector<16x8xf32>
    %82 = arith.index_cast %c5_i32 : i32 to index
    %c0_41 = arith.constant 0 : index
    %83 = vector.load %arg6[%82, %c0_41] : memref<16x8xf32, #tpu.memory_space<vmem>>, vector<1x8xf32>
    %84 = vector.broadcast %83 : vector<1x8xf32> to vector<16x8xf32>
    %85 = arith.mulf %81, %84 : vector<16x8xf32>
    %86 = arith.addf %78, %85 : vector<16x8xf32>
    %c6_i32 = arith.constant 6 : i32
    %c16_i32_42 = arith.constant 16 : i32
    %87 = arith.subi %c16_i32_42, %c6_i32 : i32
    %88 = arith.index_cast %87 : i32 to index
    %c0_43 = arith.constant 0 : index
    %89 = vector.load %arg12[%88, %c0_43] : memref<32x8xf32, #tpu.memory_space<vmem>>, vector<16x8xf32>
    %90 = arith.index_cast %c6_i32 : i32 to index
    %c0_44 = arith.constant 0 : index
    %91 = vector.load %arg6[%90, %c0_44] : memref<16x8xf32, #tpu.memory_space<vmem>>, vector<1x8xf32>
    %92 = vector.broadcast %91 : vector<1x8xf32> to vector<16x8xf32>
    %93 = arith.mulf %89, %92 : vector<16x8xf32>
    %94 = arith.addf %86, %93 : vector<16x8xf32>
    %c7_i32 = arith.constant 7 : i32
    %c16_i32_45 = arith.constant 16 : i32
    %95 = arith.subi %c16_i32_45, %c7_i32 : i32
    %96 = arith.index_cast %95 : i32 to index
    %c0_46 = arith.constant 0 : index
    %97 = vector.load %arg12[%96, %c0_46] : memref<32x8xf32, #tpu.memory_space<vmem>>, vector<16x8xf32>
    %98 = arith.index_cast %c7_i32 : i32 to index
    %c0_47 = arith.constant 0 : index
    %99 = vector.load %arg6[%98, %c0_47] : memref<16x8xf32, #tpu.memory_space<vmem>>, vector<1x8xf32>
    %100 = vector.broadcast %99 : vector<1x8xf32> to vector<16x8xf32>
    %101 = arith.mulf %97, %100 : vector<16x8xf32>
    %102 = arith.addf %94, %101 : vector<16x8xf32>
    %c8_i32 = arith.constant 8 : i32
    %c16_i32_48 = arith.constant 16 : i32
    %103 = arith.subi %c16_i32_48, %c8_i32 : i32
    %104 = arith.index_cast %103 : i32 to index
    %c0_49 = arith.constant 0 : index
    %105 = vector.load %arg12[%104, %c0_49] : memref<32x8xf32, #tpu.memory_space<vmem>>, vector<16x8xf32>
    %106 = arith.index_cast %c8_i32 : i32 to index
    %c0_50 = arith.constant 0 : index
    %107 = vector.load %arg6[%106, %c0_50] : memref<16x8xf32, #tpu.memory_space<vmem>>, vector<1x8xf32>
    %108 = vector.broadcast %107 : vector<1x8xf32> to vector<16x8xf32>
    %109 = arith.mulf %105, %108 : vector<16x8xf32>
    %110 = arith.addf %102, %109 : vector<16x8xf32>
    %c9_i32 = arith.constant 9 : i32
    %c16_i32_51 = arith.constant 16 : i32
    %111 = arith.subi %c16_i32_51, %c9_i32 : i32
    %112 = arith.index_cast %111 : i32 to index
    %c0_52 = arith.constant 0 : index
    %113 = vector.load %arg12[%112, %c0_52] : memref<32x8xf32, #tpu.memory_space<vmem>>, vector<16x8xf32>
    %114 = arith.index_cast %c9_i32 : i32 to index
    %c0_53 = arith.constant 0 : index
    %115 = vector.load %arg6[%114, %c0_53] : memref<16x8xf32, #tpu.memory_space<vmem>>, vector<1x8xf32>
    %116 = vector.broadcast %115 : vector<1x8xf32> to vector<16x8xf32>
    %117 = arith.mulf %113, %116 : vector<16x8xf32>
    %118 = arith.addf %110, %117 : vector<16x8xf32>
    %c10_i32 = arith.constant 10 : i32
    %c16_i32_54 = arith.constant 16 : i32
    %119 = arith.subi %c16_i32_54, %c10_i32 : i32
    %120 = arith.index_cast %119 : i32 to index
    %c0_55 = arith.constant 0 : index
    %121 = vector.load %arg12[%120, %c0_55] : memref<32x8xf32, #tpu.memory_space<vmem>>, vector<16x8xf32>
    %122 = arith.index_cast %c10_i32 : i32 to index
    %c0_56 = arith.constant 0 : index
    %123 = vector.load %arg6[%122, %c0_56] : memref<16x8xf32, #tpu.memory_space<vmem>>, vector<1x8xf32>
    %124 = vector.broadcast %123 : vector<1x8xf32> to vector<16x8xf32>
    %125 = arith.mulf %121, %124 : vector<16x8xf32>
    %126 = arith.addf %118, %125 : vector<16x8xf32>
    %c11_i32 = arith.constant 11 : i32
    %c16_i32_57 = arith.constant 16 : i32
    %127 = arith.subi %c16_i32_57, %c11_i32 : i32
    %128 = arith.index_cast %127 : i32 to index
    %c0_58 = arith.constant 0 : index
    %129 = vector.load %arg12[%128, %c0_58] : memref<32x8xf32, #tpu.memory_space<vmem>>, vector<16x8xf32>
    %130 = arith.index_cast %c11_i32 : i32 to index
    %c0_59 = arith.constant 0 : index
    %131 = vector.load %arg6[%130, %c0_59] : memref<16x8xf32, #tpu.memory_space<vmem>>, vector<1x8xf32>
    %132 = vector.broadcast %131 : vector<1x8xf32> to vector<16x8xf32>
    %133 = arith.mulf %129, %132 : vector<16x8xf32>
    %134 = arith.addf %126, %133 : vector<16x8xf32>
    %c12_i32 = arith.constant 12 : i32
    %c16_i32_60 = arith.constant 16 : i32
    %135 = arith.subi %c16_i32_60, %c12_i32 : i32
    %136 = arith.index_cast %135 : i32 to index
    %c0_61 = arith.constant 0 : index
    %137 = vector.load %arg12[%136, %c0_61] : memref<32x8xf32, #tpu.memory_space<vmem>>, vector<16x8xf32>
    %138 = arith.index_cast %c12_i32 : i32 to index
    %c0_62 = arith.constant 0 : index
    %139 = vector.load %arg6[%138, %c0_62] : memref<16x8xf32, #tpu.memory_space<vmem>>, vector<1x8xf32>
    %140 = vector.broadcast %139 : vector<1x8xf32> to vector<16x8xf32>
    %141 = arith.mulf %137, %140 : vector<16x8xf32>
    %142 = arith.addf %134, %141 : vector<16x8xf32>
    %c13_i32 = arith.constant 13 : i32
    %c16_i32_63 = arith.constant 16 : i32
    %143 = arith.subi %c16_i32_63, %c13_i32 : i32
    %144 = arith.index_cast %143 : i32 to index
    %c0_64 = arith.constant 0 : index
    %145 = vector.load %arg12[%144, %c0_64] : memref<32x8xf32, #tpu.memory_space<vmem>>, vector<16x8xf32>
    %146 = arith.index_cast %c13_i32 : i32 to index
    %c0_65 = arith.constant 0 : index
    %147 = vector.load %arg6[%146, %c0_65] : memref<16x8xf32, #tpu.memory_space<vmem>>, vector<1x8xf32>
    %148 = vector.broadcast %147 : vector<1x8xf32> to vector<16x8xf32>
    %149 = arith.mulf %145, %148 : vector<16x8xf32>
    %150 = arith.addf %142, %149 : vector<16x8xf32>
    %c14_i32 = arith.constant 14 : i32
    %c16_i32_66 = arith.constant 16 : i32
    %151 = arith.subi %c16_i32_66, %c14_i32 : i32
    %152 = arith.index_cast %151 : i32 to index
    %c0_67 = arith.constant 0 : index
    %153 = vector.load %arg12[%152, %c0_67] : memref<32x8xf32, #tpu.memory_space<vmem>>, vector<16x8xf32>
    %154 = arith.index_cast %c14_i32 : i32 to index
    %c0_68 = arith.constant 0 : index
    %155 = vector.load %arg6[%154, %c0_68] : memref<16x8xf32, #tpu.memory_space<vmem>>, vector<1x8xf32>
    %156 = vector.broadcast %155 : vector<1x8xf32> to vector<16x8xf32>
    %157 = arith.mulf %153, %156 : vector<16x8xf32>
    %158 = arith.addf %150, %157 : vector<16x8xf32>
    %c15_i32 = arith.constant 15 : i32
    %c16_i32_69 = arith.constant 16 : i32
    %159 = arith.subi %c16_i32_69, %c15_i32 : i32
    %160 = arith.index_cast %159 : i32 to index
    %c0_70 = arith.constant 0 : index
    %161 = vector.load %arg12[%160, %c0_70] : memref<32x8xf32, #tpu.memory_space<vmem>>, vector<16x8xf32>
    %162 = arith.index_cast %c15_i32 : i32 to index
    %c0_71 = arith.constant 0 : index
    %163 = vector.load %arg6[%162, %c0_71] : memref<16x8xf32, #tpu.memory_space<vmem>>, vector<1x8xf32>
    %164 = vector.broadcast %163 : vector<1x8xf32> to vector<16x8xf32>
    %165 = arith.mulf %161, %164 : vector<16x8xf32>
    %166 = arith.addf %158, %165 : vector<16x8xf32>
    %c16_i32_72 = arith.constant 16 : i32
    %167 = arith.mulf %166, %29 : vector<16x8xf32>
    %168 = arith.truncf %167 : vector<16x8xf32> to vector<16x8xbf16>
    %c0_73 = arith.constant 0 : index
    %c0_74 = arith.constant 0 : index
    %169 = vector.load %arg8[%c0_73, %c0_74] : memref<8x8xbf16, #tpu.memory_space<vmem>>, vector<8x8xbf16>
    %cst_75 = arith.constant dense<0.000000e+00> : vector<16x8xf32>
    %170 = tpu.matmul %168, %169, %cst_75 {dimension_numbers = #tpu.dot_dimension_numbers<[1], [0], [0], [1], [0, 0, 1, 1], [], []>} : vector<16x8xbf16>, vector<8x8xbf16>, vector<16x8xf32> -> vector<16x8xf32>
    %c0_76 = arith.constant 0 : index
    %c0_77 = arith.constant 0 : index
    %171 = vector.load %arg9[%c0_76, %c0_77] : memref<1x8xf32, #tpu.memory_space<vmem>>, vector<1x8xf32>
    %172 = vector.broadcast %171 : vector<1x8xf32> to vector<16x8xf32>
    %173 = arith.addf %170, %172 : vector<16x8xf32>
    %c0_78 = arith.constant 0 : index
    %c0_79 = arith.constant 0 : index
    %c0_80 = arith.constant 0 : index
    %174 = vector.load %arg10[%c0_78, %c0_79, %c0_80] : memref<1x16x8xf32, #tpu.memory_space<vmem>>, vector<1x16x8xf32>
    %175 = vector.shape_cast %174 : vector<1x16x8xf32> to vector<16x8xf32>
    %176 = vector.shape_cast %173 : vector<16x8xf32> to vector<1x16x8xf32>
    tpu.vector_store %arg10[%c0_78, %c0_79, %c0_80], %176 {strides = array<i32>} : memref<1x16x8xf32, #tpu.memory_space<vmem>>, vector<1x16x8xf32>,
    return
  }
  func.func @transform_0(%arg0: i32) -> (i32, i32, i32) {
    %c0_i32 = arith.constant 0 : i32
    %c0_i32_0 = arith.constant 0 : i32
    %c0_i32_1 = arith.constant 0 : i32
    return %arg0, %c0_i32, %c0_i32_0 : i32, i32, i32
  }
  func.func @transform_1(%arg0: i32) -> (i32, i32) {
    %c0_i32 = arith.constant 0 : i32
    %c0_i32_0 = arith.constant 0 : i32
    %c0_i32_1 = arith.constant 0 : i32
    return %c0_i32, %c0_i32_0 : i32, i32
  }
  func.func @transform_2(%arg0: i32) -> (i32, i32) {
    %c0_i32 = arith.constant 0 : i32
    %c0_i32_0 = arith.constant 0 : i32
    %c0_i32_1 = arith.constant 0 : i32
    return %c0_i32, %c0_i32_0 : i32, i32
  }
  func.func @transform_3(%arg0: i32) -> (i32, i32) {
    %c0_i32 = arith.constant 0 : i32
    %c0_i32_0 = arith.constant 0 : i32
    %c0_i32_1 = arith.constant 0 : i32
    return %c0_i32, %c0_i32_0 : i32, i32
  }
  func.func @transform_4(%arg0: i32) -> (i32, i32) {
    %c0_i32 = arith.constant 0 : i32
    %c0_i32_0 = arith.constant 0 : i32
    %c0_i32_1 = arith.constant 0 : i32
    return %c0_i32, %c0_i32_0 : i32, i32
  }
  func.func @transform_5(%arg0: i32) -> (i32, i32) {
    %c0_i32 = arith.constant 0 : i32
    %c0_i32_0 = arith.constant 0 : i32
    %c0_i32_1 = arith.constant 0 : i32
    return %c0_i32, %c0_i32_0 : i32, i32
  }
  func.func @transform_6(%arg0: i32) -> (i32, i32) {
    %c0_i32 = arith.constant 0 : i32
    %c0_i32_0 = arith.constant 0 : i32
    %c0_i32_1 = arith.constant 0 : i32
    return %c0_i32, %c0_i32_0 : i32, i32
  }
  func.func @transform_7(%arg0: i32) -> (i32, i32) {
    %c0_i32 = arith.constant 0 : i32
    %c0_i32_0 = arith.constant 0 : i32
    %c0_i32_1 = arith.constant 0 : i32
    return %c0_i32, %c0_i32_0 : i32, i32
  }
  func.func @transform_8(%arg0: i32) -> (i32, i32) {
    %c0_i32 = arith.constant 0 : i32
    %c0_i32_0 = arith.constant 0 : i32
    %c0_i32_1 = arith.constant 0 : i32
    return %c0_i32, %c0_i32_0 : i32, i32
  }
  func.func @transform_9(%arg0: i32) -> (i32, i32, i32) {
    %c0_i32 = arith.constant 0 : i32
    %c0_i32_0 = arith.constant 0 : i32
    %c0_i32_1 = arith.constant 0 : i32
    return %arg0, %c0_i32, %c0_i32_0 : i32, i32, i32
  }
}

</mosaic_0001>

<bundles_post_ra>
// kernel: hyena_forward.2
= control target key start
LH: loop header
LB: loop body
LE: loop exit
PB: predicated region body
PF: predicated region fallthrough
CT: control target
= control target key end

     0   :  { %16 = vsyncpa [#allocation3], 0  ;;  %s1286_s20 = smov [#allocation2]   ;;  %s1287_s22 = smov 128   ;;  %s1988_s0 = inlined_call_operand.vmem [shape: f32[16,3], index: 0, kind: input, shape index: {}]   ;;  %s1989_s1 = inlined_call_operand.vmem [shape: f32[16,1], index: 1, kind: input, shape index: {}]   ;;  %s1990_s2 = inlined_call_operand.vmem [shape: f32[3,64], index: 2, kind: input, shape index: {}]   ;;  %s1991_s3 = inlined_call_operand.vmem [shape: f32[1,64], index: 3, kind: input, shape index: {}]   ;;  %s1992_s4 = inlined_call_operand.vmem [shape: f32[1,64], index: 4, kind: input, shape index: {}]   ;;  %s1993_s5 = inlined_call_operand.vmem [shape: f32[64,64], index: 5, kind: input, shape index: {}]   ;;  %s1994_s6 = inlined_call_operand.vmem [shape: f32[1,64], index: 6, kind: input, shape index: {}]   ;;  %s1995_s7 = inlined_call_operand.hbm [shape: f32[64,64], index: 7, kind: input, shape index: {}]   ;;  %s1996_s8 = inlined_call_operand.vmem [shape: f32[1,64], index: 8, kind: input, shape index: {}]   ;;  %s1997_s9 = inlined_call_operand.vmem [shape: f32[64,8], index: 9, kind: input, shape index: {}]   ;;  %s1998_s10 = inlined_call_operand.vmem [shape: f32[1,8], index: 10, kind: input, shape index: {}]   ;;  %s1999_s11 = inlined_call_operand.vmem [shape: f32[16,8], index: 11, kind: output, shape index: {}]  }
   0x1   :  { %s35_s19 = sshll.u32 %s1995_s7, 4  ;;  %s37_s21 = sshll.u32 %s1286_s20, 4  ;;  %s36_s19 = int_to_ptr.hbm [resolvable:$true] %s35_s19  ;;  %s38_s21 = int_to_ptr.vmem [resolvable:$true] %s37_s21 }
   0x2   :  { %s1288_s23 = smov 8  }
   0x3   :  { %43 = dma.hbm_to_vmem [thread:$0]  %s36_s19, 1024, %s38_s21, [#allocation3], %s1287_s22, %s1287_s22, %s1288_s23  }
   0x4   :  { %1284 = dma.done.wait [#allocation3], 1024  }
   0x5   :  { %1285 = vsyncadd [#allocation3], 4294966272  ;;  %v1289_v0 = vmov 0   ;;  %v1290_v1 = vmov 2   ;;  %v55_v2 = vld [vmem:[%s1988_s0 + $0x8] sm:$0xff]  ;;  %v54_v3 = vld [vmem:[%s1988_s0] sm:$0xff] }
   0x6   :  { %1245 = vset.pattern.permute.xlu1 %v1289_v0  ;;  %1243 = vset.pattern.permute.xlu0 %v1289_v0  ;;  %v1291_v4 = vmov 1   ;;  %v425_v8 = vld [vmem:[%s1993_s5 + $0x38] sm:$0xff]  ;;  %v424_v9 = vld [vmem:[%s1993_s5 + $0x30] sm:$0xff]  ;;  %v423_v10 = vld [vmem:[%s1993_s5 + $0x28] sm:$0xff]  ;;  %v1292_v63 = vmov 683565275  }
   0x7   :  { %1247 = vset.pattern.permute.xlu2 %v1290_v1  ;;  %64 = vperm.xlu1 %1245, %v55_v2   ;;  %v56_v11 = vld [vmem:[%s1990_s2] sm:$0x7]  ;;  %v421_v15 = vld [vmem:[%s1993_s5 + $0x18] sm:$0xff]  ;;  %v420_v18 = vld [vmem:[%s1993_s5 + $0x10] sm:$0xff] }
   0x8   :  { %59 = vperm.xlu0 %1243, %v54_v3   ;;  %84 = vperm.xlu2 %1247, %v54_v3   ;;  %v422_v12 = vld [vmem:[%s1993_s5 + $0x20] sm:$0xff]  ;;  %v67_v13 = vperm.slane %v56_v11, 0  ;;  %v78_v14 = vperm.slane %v56_v11, 1  ;;  %v91_v16 = vperm.slane %v56_v11, 2  ;;  %v419_v25 = vld [vmem:[%s1993_s5 + $0x8] sm:$0xff] }
   0x9   :  { %445 = vmatpush.msra.mxu0 %v425_v8  ;;  %1223 = vmatpush.msra.mxu3 %v425_v8  ;;  %v1251_v28 = vld [vmem:[%s1991_s3] ss:$0 sm:$0xff]  ;;  %v1295_v8 = vmov 2102212464   ;;  %v1296_v11 = vmov 920167782  }
   0xa   :  { %v418_v31 = vld [vmem:[%s1993_s5] sm:$0xff] }
   0xb   :  { %446 = vmatpush.msra.mxu0 %v424_v9  ;;  %1224 = vmatpush.msra.mxu3 %v424_v9  ;;  %v1405_v32 = vld [vmem:[%s1992_s4] ss:$0 sm:$0xff] }
   0xd   :  { %447 = vmatpush.msra.mxu0 %v423_v10  ;;  %1225 = vmatpush.msra.mxu3 %v423_v10 }
   0xf   :  { %1246 = vset.pattern.permute.xlu1 %v1291_v4  ;;  %448 = vmatpush.msra.mxu0 %v422_v12 }
  0x10   :  { %1244 = vset.pattern.permute.xlu0 %v1291_v4  ;;  %75 = vperm.xlu1 %1246, %v55_v2  }
  0x11   :  { %71 = vperm.xlu0 %1244, %v54_v3   ;;  %88 = vperm.xlu2 %1247, %v55_v2   ;;  %v1293_v2 = vmov 2475754826  }
  0x12   :  { %1226 = vmatpush.msra.mxu3 %v422_v12  ;;  %449 = vmatpush.msra.mxu0 %v421_v15 }
  0x14   :  { %1227 = vmatpush.msra.mxu3 %v421_v15  ;;  %450 = vmatpush.msra.mxu0 %v420_v18 }
  0x16   :  { %1228 = vmatpush.msra.mxu3 %v420_v18  ;;  %451 = vmatpush.msra.mxu0 %v419_v25 }
  0x18   :  { %1248 = vset.pattern.permute.xlu1 %v1289_v0  ;;  %1229 = vmatpush.msra.mxu3 %v419_v25 }
  0x19   :  { %1250 = vset.pattern.permute.xlu0 %v1289_v0  ;;  %1249 = vset.pattern.permute.xlu2 %v1289_v0 }
  0x1a   :  { %452 = vmatpush.msra.mxu0 %v418_v31  ;;  %1230 = vmatpush.msra.mxu3 %v418_v31 }
  0x62   :  { %v85_v5 = vpop.permute.xlu2 %84 }
  0x63   :  { %v92_v26 = vmul.f32 %v91_v16, %v85_v5  ;;  %v1294_v5 = vmov 2131351028  }
  0x6b   :  { %v89_v17 = vpop.permute.xlu2 %88 }
  0x6c   :  { %v93_v27 = vmul.f32 %v91_v16, %v89_v17 }
  0x79   :  { %v65_v7 = vpop.permute.xlu1 %64 }
  0x7a   :  { %v60_v6 = vpop.permute.xlu0 %59  ;;  %v69_v22 = vmul.f32 %v67_v13, %v65_v7 }
  0x7b   :  { %v68_v21 = vmul.f32 %v67_v13, %v60_v6 }
  0x82   :  { %v76_v19 = vpop.permute.xlu1 %75 }
  0x83   :  { %v72_v20 = vpop.permute.xlu0 %71  ;;  %v80_v23 = vmul.f32 %v78_v14, %v76_v19 }
  0x84   :  { %v79_v24 = vmul.f32 %v78_v14, %v72_v20  ;;  %v1297_v14 = vmov 1326507024  }
  0x85   :  { %v82_v29 = vadd.f32 %v80_v23, %v69_v22 }
  0x86   :  { %v81_v30 = vadd.f32 %v79_v24, %v68_v21 }
  0x87   :  { %v95_v33 = vadd.f32 %v93_v27, %v82_v29 }
  0x88   :  { %v94_v34 = vadd.f32 %v92_v26, %v81_v30 }
  0x89   :  { %v101_v35 = vadd.f32 %v1251_v28, %v95_v33 }
  0x8a   :  { %v100_v36 = vadd.f32 %v1251_v28, %v94_v34 }
  0x8b   :  { %v1408_v37 = vmul.f32 %v1405_v32, %v101_v35 }
  0x8c   :  { %v1411_v38 = vmul.f32 %v1405_v32, %v100_v36 }
  0x8d   :  { %v266_v39 = vand.u32 2139095040, %v1408_v37  ;;  %v263_v42 = vand.u32 2147483647, %v1408_v37 }
  0x8e   :  { %v111_v40 = vand.u32 2139095040, %v1411_v38  ;;  %v108_v41 = vand.u32 2147483647, %v1411_v38 }
  0x8f   :  { %v267_v43 = vshrl.u32 %v266_v39, 23  ;;  %v270_v49 = vand.u32 8388607, %v263_v42 }
  0x90   :  { %v112_v44 = vshrl.u32 %v111_v40, 23  ;;  %v115_v45 = vand.u32 8388607, %v108_v41 }
  0x91   :  { %v1202_v46 = vadd.s32 4294967169, %v267_v43  ;;  %v271_v53 = vor.u32 8388608, %v270_v49 }
  0x92   :  { %v1199_v47 = vadd.s32 4294967169, %v112_v44  ;;  %v116_v48 = vor.u32 8388608, %v115_v45 }
  0x93   :  { %v273_v50 = vadd.s32 1, %v1202_v46  ;;  %v1426_v60 = vshll.u32 %v271_v53, 8 }
  0x94   :  { %v118_v51 = vadd.s32 1, %v1199_v47  ;;  %v1421_v52 = vshll.u32 %v116_v48, 8 }
  0x95   :  { %vm274_vm0 = vcmp.gt.s32.totalorder %v273_v50, 0 }
  0x96   :  { %vm119_vm1 = vcmp.gt.s32.totalorder %v118_v51, 0  ;;  %v275_v54 = vsel %vm274_vm0, %v273_v50, 0  ;;  %v157_v59 = vand.u32 65535, %v1421_v52  ;;  %v158_v19 = vshrl.u32 %v1421_v52, 16 }
  0x97   :  { %v120_v55 = vsel %vm119_vm1, %v118_v51, 0  ;;  %v1423_v56 = vand.u32 31, %v275_v54  ;;  %v1444_v20 = vshrl.u32 %v275_v54, 5 }
  0x98   :  { %v122_v57 = vand.u32 31, %v120_v55  ;;  %v1431_v62 = vshrl.u32 %v120_v55, 5 }
  0x99   :  { %v1429_v61 = vsub.s32 32, %v1423_v56  ;;  %v280_v36 = vshll.u32 %v1292_v63, %v1423_v56  ;;  %v283_v47 = vshll.u32 %v1293_v2, %v1423_v56  ;;  %v286_v51 = vshll.u32 %v1294_v5, %v1423_v56 }
  0x9a   :  { %v123_v58 = vsub.s32 32, %v122_v57  ;;  %v125_v1 = vshll.u32 %v1292_v63, %v122_v57  ;;  %v128_v3 = vshll.u32 %v1293_v2, %v122_v57  ;;  %v131_v7 = vshll.u32 %v1294_v5, %v122_v57 }
  0x9b   :  { %v134_v10 = vshll.u32 %v1295_v8, %v122_v57  ;;  %v137_v13 = vshll.u32 %v1296_v11, %v122_v57  ;;  %vm140_vm2 = vcmp.lt.s32.totalorder %v1431_v62, 1  ;;  %vm143_vm3 = vcmp.lt.s32.totalorder %v1431_v62, 4 }
  0x9c   :  { %v126_v4 = vshrl.u32 %v1293_v2, %v123_v58  ;;  %v129_v6 = vshrl.u32 %v1294_v5, %v123_v58  ;;  %v132_v9 = vshrl.u32 %v1295_v8, %v123_v58  ;;  %v135_v12 = vshrl.u32 %v1296_v11, %v123_v58 }
  0x9d   :  { %v138_v15 = vshrl.u32 %v1297_v14, %v123_v58  ;;  %v124_v23 = vshrl.u32 %v1292_v63, %v123_v58  ;;  %vm142_vm4 = vcmp.lt.s32.totalorder %v1431_v62, 3  ;;  %v281_v28 = vshrl.u32 %v1293_v2, %v1429_v61 }
  0x9e   :  { %v127_v16 = vor.u32 %v126_v4, %v125_v1  ;;  %v130_v17 = vor.u32 %v129_v6, %v128_v3  ;;  %v133_v18 = vor.u32 %v132_v9, %v131_v7  ;;  %v136_v21 = vor.u32 %v135_v12, %v134_v10 }
  0x9f   :  { %v139_v22 = vor.u32 %v138_v15, %v137_v13  ;;  %vm141_vm5 = vcmp.lt.s32.totalorder %v1431_v62, 2  ;;  %v1467_v46 = vor.u32 %v281_v28, %v280_v36  ;;  %v284_v48 = vshrl.u32 %v1294_v5, %v1429_v61 }
  0xa0   :  { %v148_v24 = vsel %vm140_vm2, %v127_v16, %v130_v17  ;;  %v152_v25 = vsel %vm140_vm2, %v130_v17, %v133_v18  ;;  %v149_v26 = vsel %vm143_vm3, %v136_v21, 920167782  ;;  %v145_v29 = vsel %vm143_vm3, %v133_v18, 2102212464 }
  0xa1   :  { %v153_v27 = vsel %vm143_vm3, %v139_v22, 1326507024  ;;  %v150_v30 = vsel %vm142_vm4, %v133_v18, %v149_v26  ;;  %v1457_v33 = vsel %vm140_vm2, %v124_v23, %v127_v16  ;;  %v146_v45 = vsel %vm142_vm4, %v130_v17, %v145_v29 }
  0xa2   :  { %v154_v31 = vsel %vm142_vm4, %v136_v21, %v153_v27  ;;  %v151_v34 = vsel %vm141_vm5, %v148_v24, %v150_v30  ;;  %v287_v53 = vshrl.u32 %v1295_v8, %v1429_v61  ;;  %v289_v58 = vshll.u32 %v1295_v8, %v1423_v56 }
  0xa3   :  { %v155_v35 = vsel %vm141_vm5, %v152_v25, %v154_v31  ;;  %v181_v43 = vand.u32 65535, %v151_v34  ;;  %v182_v44 = vshrl.u32 %v151_v34, 16  ;;  %v1479_v16 = vor.u32 %v284_v48, %v283_v47 }
  0xa4   :  { %v159_v39 = vand.u32 65535, %v155_v35  ;;  %v160_v40 = vshrl.u32 %v155_v35, 16  ;;  %v290_v21 = vshrl.u32 %v1296_v11, %v1429_v61  ;;  %v292_v25 = vshll.u32 %v1296_v11, %v1423_v56 }
  0xa5   :  { %v184_v55 = vmul.u32 %v182_v44, %v157_v59  ;;  %v185_v57 = vmul.u32 %v181_v43, %v158_v19  ;;  %v183_v4 = vmul.u32 %v181_v43, %v157_v59  ;;  %v186_v6 = vmul.u32 %v182_v44, %v158_v19 }
  0xa6   :  { %v162_v49 = vmul.u32 %v160_v40, %v157_v59  ;;  %v163_v50 = vmul.u32 %v159_v39, %v158_v19  ;;  %v161_v54 = vmul.u32 %v159_v39, %v157_v59  ;;  %v164_v1 = vmul.u32 %v160_v40, %v158_v19 }
  0xa7   :  { %v187_v12 = vshll.u32 %v184_v55, 16  ;;  %v189_v15 = vshll.u32 %v185_v57, 16  ;;  %v1485_v19 = vor.u32 %v287_v53, %v286_v51  ;;  %v291_v28 = vor.u32 %v290_v21, %v289_v58 }
  0xa8   :  { %v165_v3 = vshll.u32 %v162_v49, 16  ;;  %v166_v7 = vshrl.u32 %v162_v49, 16  ;;  %v167_v9 = vshll.u32 %v163_v50, 16  ;;  %v168_v10 = vshrl.u32 %v163_v50, 16 }
  0xa9   :  { %vm191_vm7 = vc.u32 %v183_v4, %v187_v12  ;;  %v193_v18 = vadd.s32 %v187_v12, %v183_v4  ;;  %v293_v29 = vshrl.u32 %v1297_v14, %v1429_v61  ;;  %v188_v30 = vshrl.u32 %v184_v55, 16 }
  0xaa   :  { %vm169_vm6 = vc.u32 %v161_v54, %v165_v3  ;;  %v171_v13 = vadd.s32 %v165_v3, %v161_v54  ;;  %v192_v59 = vsel %vm191_vm7, 1, %v1289_v0  ;;  %v190_v31 = vshrl.u32 %v185_v57, 16 }
  0xab   :  { %v170_v17 = vsel %vm169_vm6, 1, %v1289_v0  ;;  %v194_v24 = vadd.s32 %v192_v59, %v186_v6  ;;  %vm195_vm9 = vc.u32 %v193_v18, %v189_v15  ;;  %v1493_v34 = vadd.s32 %v193_v18, %v189_v15 }
  0xac   :  { %v172_v22 = vadd.s32 %v170_v17, %v164_v1  ;;  %vm173_vm8 = vc.u32 %v171_v13, %v167_v9  ;;  %v196_v27 = vsel %vm195_vm9, 1, %v1289_v0  ;;  %v294_v39 = vor.u32 %v293_v29, %v292_v25 }
  0xad   :  { %v174_v23 = vsel %vm173_vm8, 1, %v1289_v0  ;;  %v198_v35 = vadd.s32 %v196_v27, %v194_v24  ;;  %vm295_vm10 = vcmp.lt.s32.totalorder %v1444_v20, 1  ;;  %vm298_vm11 = vcmp.lt.s32.totalorder %v1444_v20, 4 }
  0xae   :  { %v176_v26 = vadd.s32 %v174_v23, %v172_v22  ;;  %vm297_vm12 = vcmp.lt.s32.totalorder %v1444_v20, 3  ;;  %v303_v56 = vsel %vm295_vm10, %v1467_v46, %v1479_v16  ;;  %v304_v43 = vsel %vm298_vm11, %v291_v28, 920167782 }
  0xaf   :  { %v199_v40 = vadd.s32 %v198_v35, %v188_v30  ;;  %vm296_vm13 = vcmp.lt.s32.totalorder %v1444_v20, 2  ;;  %v305_v47 = vsel %vm297_vm12, %v1485_v19, %v304_v43  ;;  %v307_v48 = vsel %vm295_vm10, %v1479_v16, %v1485_v19 }
  0xb0   :  { %v177_v36 = vadd.s32 %v176_v26, %v166_v7  ;;  %v147_v49 = vsel %vm141_vm5, %v1457_v33, %v146_v45  ;;  %v306_v51 = vsel %vm296_vm13, %v303_v56, %v305_v47  ;;  %v308_v53 = vsel %vm298_vm11, %v294_v39, 1326507024 }
  0xb1   :  { %v200_v50 = vadd.s32 %v199_v40, %v190_v31  ;;  %v309_v54 = vsel %vm297_vm12, %v291_v28, %v308_v53  ;;  %v312_v55 = vand.u32 65535, %v1426_v60  ;;  %v336_v57 = vand.u32 65535, %v306_v51 }
  0xb2   :  { %v1504_v44 = vadd.s32 %v177_v36, %v168_v10  ;;  %v310_v62 = vsel %vm296_vm13, %v307_v48, %v309_v54  ;;  %v313_v33 = vshrl.u32 %v1426_v60, 16  ;;  %v337_v45 = vshrl.u32 %v306_v51, 16 }
  0xb3   :  { %v204_v58 = vadd.s32 1, %v200_v50  ;;  %v201_v1 = vmul.u32 %v1421_v52, %v147_v49  ;;  %v314_v3 = vand.u32 65535, %v310_v62  ;;  %v315_v4 = vshrl.u32 %v310_v62, 16 }
  0xb4   :  { %vm203_vm14 = vc.u32 %v1504_v44, %v1493_v34  ;;  %v339_v7 = vmul.u32 %v337_v45, %v312_v55  ;;  %v340_v9 = vmul.u32 %v336_v57, %v313_v33  ;;  %v338_v15 = vmul.u32 %v336_v57, %v312_v55 }
  0xb5   :  { %v205_v6 = vsel %vm203_vm14, %v204_v58, %v200_v50  ;;  %v317_v12 = vmul.u32 %v315_v4, %v312_v55  ;;  %v318_v13 = vmul.u32 %v314_v3, %v313_v33  ;;  %v341_v17 = vmul.u32 %v337_v45, %v313_v33 }
  0xb6   :  { %v206_v10 = vadd.s32 %v205_v6, %v201_v1  ;;  %v342_v18 = vshll.u32 %v339_v7, 16  ;;  %v316_v22 = vmul.u32 %v314_v3, %v312_v55  ;;  %v319_v59 = vmul.u32 %v315_v4, %v313_v33 }
  0xb7   :  { %v320_v23 = vshll.u32 %v317_v12, 16  ;;  %v322_v24 = vshll.u32 %v318_v13, 16  ;;  %v344_v25 = vshll.u32 %v340_v9, 16  ;;  %v300_v35 = vsel %vm298_vm11, %v1485_v19, 2102212464 }
  0xb8   :  { %v207_v21 = vadd.s32 536870912, %v206_v10  ;;  %vm346_vm15 = vc.u32 %v338_v15, %v342_v18  ;;  %v348_v26 = vadd.s32 %v342_v18, %v338_v15  ;;  %v279_v39 = vshrl.u32 %v1292_v63, %v1429_v61 }
  0xb9   :  { %vm324_vm0 = vc.u32 %v316_v22, %v320_v23  ;;  %v326_v27 = vadd.s32 %v320_v23, %v316_v22  ;;  %v347_v28 = vsel %vm346_vm15, 1, %v1289_v0  ;;  %v321_v47 = vshrl.u32 %v317_v12, 16 }
  0xba   :  { %v1530_v52 = vshrl.u32 %v207_v21, 30  ;;  %v325_v29 = vsel %vm324_vm0, 1, %v1289_v0  ;;  %v349_v30 = vadd.s32 %v347_v28, %v341_v17  ;;  %vm350_vm1 = vc.u32 %v348_v26, %v344_v25 }
  0xbb   :  { %v327_v36 = vadd.s32 %v325_v29, %v319_v59  ;;  %vm328_vm2 = vc.u32 %v326_v27, %v322_v24  ;;  %v351_v56 = vsel %vm350_vm1, 1, %v1289_v0  ;;  %v299_v50 = vsel %vm295_vm10, %v279_v39, %v1467_v46 }
  0xbc   :  { %v209_v31 = vshll.u32 %v1530_v52, 30  ;;  %v329_v40 = vsel %vm328_vm2, 1, %v1289_v0  ;;  %v353_v49 = vadd.s32 %v351_v56, %v349_v30  ;;  %v301_v19 = vsel %vm297_vm12, %v1479_v16, %v300_v35 }
  0xbd   :  { %v331_v48 = vadd.s32 %v329_v40, %v327_v36  ;;  %v343_v51 = vshrl.u32 %v339_v7, 16  ;;  %v323_v61 = vshrl.u32 %v318_v13, 16  ;;  %v345_v55 = vshrl.u32 %v340_v9, 16 }
  0xbe   :  { %v210_v43 = vsub.s32 %v206_v10, %v209_v31  ;;  %v302_v45 = vsel %vm296_vm13, %v299_v50, %v301_v19  ;;  %v352_v1 = vadd.s32 %v348_v26, %v344_v25  ;;  %v202_v9 = vadd.s32 %v1493_v34, %v1504_v44 }
  0xbf   :  { %v332_v54 = vadd.s32 %v331_v48, %v321_v47  ;;  %v354_v57 = vadd.s32 %v353_v49, %v343_v51  ;;  %v356_v16 = vmul.u32 %v1426_v60, %v302_v45  ;;  %vm110_vm7 = vcmp.lt.s32.totalorder %v1411_v38, 0 }
  0xc0   :  { %vm211_vm3 = vcmp.lt.s32.totalorder %v210_v43, 0  ;;  %v212_v53 = vsub.s32 0, %v210_v43  ;;  %v232_v30 = vsub.s32 4, %v1530_v52  ;;  %vm1560_vm8 = vcmp.le.f32.partialorder %v108_v41, 0.7853982 }
  0xc1   :  { %v333_v62 = vadd.s32 %v332_v54, %v323_v61  ;;  %v355_v3 = vadd.s32 %v354_v57, %v345_v55  ;;  %vm1572_vm11 = vcmp.le.f32.partialorder %v263_v42, 0.7853982  ;;  %vm265_vm12 = vcmp.lt.s32.totalorder %v1408_v37, 0 }
  0xc2   :  { %v213_v58 = vsel %vm211_vm3, %v212_v53, %v210_v43  ;;  %v233_v56 = vsel %vm110_vm7, %v232_v30, %v1530_v52  ;;  %vm430_vm15 = vcmask 523264   ;;  %vm251_vm0 = vweird.f32 %v1411_v38 }
  0xc3   :  { %v214_v33 = vclz %v213_v58  ;;  %vm358_vm4 = vc.u32 %v333_v62, %v352_v1  ;;  %v359_v4 = vadd.s32 1, %v355_v3  ;;  %v357_v49 = vadd.s32 %v352_v1, %v333_v62 }
  0xc4   :  { %v235_v61 = vsel %vm1560_vm8, 0, %v233_v56 }
  0xc5   :  { %v1200_v46 = vadd.s32 4294967294, %v214_v33  ;;  %v360_v6 = vsel %vm358_vm4, %v359_v4, %v355_v3  ;;  %vm406_vm4 = vweird.f32 %v1408_v37 }
  0xc6   :  { %v361_v10 = vadd.s32 %v360_v6, %v356_v16 }
  0xc7   :  { %vm1201_vm5 = vcmp.lt.s32.totalorder %v1200_v46, 0 }
  0xc8   :  { %v217_v7 = vsel %vm1201_vm5, 0, %v1200_v46  ;;  %v362_v15 = vadd.s32 536870912, %v361_v10  ;;  %v252_v46 = vadd.s32 3, %v235_v61  ;;  %v1253_v61 = vld [vmem:[%s1994_s6] ss:$0 sm:$0xff] }
  0xc9   :  { %v218_v12 = vsub.s32 32, %v217_v7  ;;  %v222_v13 = vsub.s32 4294967266, %v217_v7  ;;  %v219_v17 = vshll.u32 %v210_v43, %v217_v7 }
  0xca   :  { %v1553_v21 = vshrl.u32 %v362_v15, 30 }
  0xcb   :  { %v220_v20 = vshrl.u32 %v202_v9, %v218_v12  ;;  %v223_v18 = vadd.s32 127, %v222_v13  ;;  %v253_v9 = vand.u32 3, %v252_v46 }
  0xcc   :  { %v364_v23 = vshll.u32 %v1553_v21, 30 }
  0xcd   :  { %v221_v22 = vor.u32 %v220_v20, %v219_v17  ;;  %v224_v59 = vshll.u32 %v223_v18, 23  ;;  %vm254_vm10 = vcmp.lt.s32.totalorder %v253_v9, 2  ;;  %vm255_vm13 = vcmp.eq.s32.totalorder %v253_v9, 0  ;;  %v776_v18 = vld [vmem:[#allocation2 + $0x20] sm:$0xff] }
  0xce   :  { %v365_v24 = vsub.s32 %v361_v10, %v364_v23  ;;  %vm258_vm14 = vcmp.eq.s32.totalorder %v253_v9, 2  ;;  %v777_v9 = vld [vmem:[#allocation2 + $0x28] sm:$0xff] }
  0xcf   :  { %v225_v60 = vor.u32 4788187, %v224_v59  ;;  %v228_v26 = vcvt.s32.f32 %v221_v22 }
  0xd0   :  { %vm366_vm6 = vcmp.lt.s32.totalorder %v365_v24, 0  ;;  %v367_v27 = vsub.s32 0, %v365_v24 }
  0xd1   :  { %v226_v25 = vand.u32 2147483647, %v225_v60  ;;  %v387_v60 = vsub.s32 4, %v1553_v21 }
  0xd2   :  { %v368_v34 = vsel %vm366_vm6, %v367_v27, %v365_v24 }
  0xd3   :  { %v229_v28 = vmul.f32 %v228_v26, %v226_v25  ;;  %v369_v29 = vclz %v368_v34  ;;  %v388_v34 = vsel %vm265_vm12, %v387_v60, %v1553_v21 }
  0xd4   :  { %v390_v30 = vsel %vm1572_vm11, 0, %v388_v34 }
  0xd5   :  { %v230_v44 = vxor.u32 2147483648, %v229_v28  ;;  %v1203_v36 = vadd.s32 4294967294, %v369_v29 }
  0xd7   :  { %v231_v35 = vsel %vm110_vm7, %v230_v44, %v229_v28  ;;  %vm1204_vm9 = vcmp.lt.s32.totalorder %v1203_v36, 0 }
  0xd8   :  { %v234_v39 = vsel %vm1560_vm8, %v1411_v38, %v231_v35  ;;  %v372_v43 = vsel %vm1204_vm9, 0, %v1203_v36 }
  0xd9   :  { %v236_v40 = vmul.f32 %v234_v39, %v234_v39  ;;  %v373_v50 = vsub.s32 32, %v372_v43  ;;  %v377_v19 = vsub.s32 4294967266, %v372_v43  ;;  %v374_v54 = vshll.u32 %v365_v24, %v372_v43 }
  0xdb   :  { %v237_v47 = vmul.f32 -0.001358992, %v236_v40  ;;  %v244_v48 = vmul.f32 -0.00019511016, %v236_v40  ;;  %v375_v53 = vshrl.u32 %v357_v49, %v373_v50  ;;  %v378_v55 = vadd.s32 127, %v377_v19 }
  0xdd   :  { %v238_v41 = vadd.f32 0.041655596, %v237_v47  ;;  %v245_v51 = vadd.f32 0.008332121, %v244_v48  ;;  %v376_v33 = vor.u32 %v375_v53, %v374_v54  ;;  %v379_v45 = vshll.u32 %v378_v55, 23 }
  0xdf   :  { %v239_v57 = vmul.f32 %v238_v41, %v236_v40  ;;  %v246_v58 = vmul.f32 %v245_v51, %v236_v40  ;;  %v380_v4 = vor.u32 4788187, %v379_v45  ;;  %v383_v6 = vcvt.s32.f32 %v376_v33 }
  0xe1   :  { %v240_v3 = vadd.f32 -0.4999988, %v239_v57  ;;  %v247_v52 = vadd.f32 -0.16666654, %v246_v58  ;;  %v381_v1 = vand.u32 2147483647, %v380_v4 }
  0xe3   :  { %v241_v16 = vmul.f32 %v240_v3, %v236_v40  ;;  %v248_v62 = vmul.f32 %v247_v52, %v236_v40  ;;  %v384_v12 = vmul.f32 %v383_v6, %v381_v1 }
  0xe5   :  { %v242_v7 = vadd.f32 1.0, %v241_v16  ;;  %v249_v10 = vadd.f32 1.0, %v248_v62  ;;  %v385_v17 = vxor.u32 2147483648, %v384_v12  ;;  %v779_v16 = vld [vmem:[#allocation2 + $0x38] sm:$0xff]  ;;  %v778_v62 = vld [vmem:[#allocation2 + $0x30] sm:$0xff] }
  0xe6   :  { %798 = vmatpush.msra.mxu1 %v779_v16 }
  0xe7   :  { %v250_v13 = vmul.f32 %v249_v10, %v234_v39  ;;  %v259_v15 = vxor.u32 2147483648, %v242_v7  ;;  %v386_v22 = vsel %vm265_vm12, %v385_v17, %v384_v12  ;;  %v407_v39 = vadd.s32 3, %v390_v30  ;;  %v774_v30 = vld [vmem:[#allocation2 + $0x10] sm:$0xff] }
  0xe8   :  { %v389_v24 = vsel %vm1572_vm11, %v1408_v37, %v386_v22  ;;  %799 = vmatpush.msra.mxu1 %v778_v62 }
  0xe9   :  { %v256_v20 = vxor.u32 2147483648, %v250_v13  ;;  %v260_v23 = vsel %vm258_vm14, %v259_v15, %v250_v13  ;;  %v391_v25 = vmul.f32 %v389_v24, %v389_v24  ;;  %v408_v48 = vand.u32 3, %v407_v39 }
  0xea   :  { %800 = vmatpush.msra.mxu1 %v777_v9 }
  0xeb   :  { %v257_v59 = vsel %vm255_vm13, %v242_v7, %v256_v20  ;;  %v392_v27 = vmul.f32 -0.001358992, %v391_v25  ;;  %v399_v28 = vmul.f32 -0.00019511016, %v391_v25  ;;  %vm410_vm1 = vcmp.eq.s32.totalorder %v408_v48, 0 }
  0xec   :  { %v261_v42 = vsel %vm254_vm10, %v257_v59, %v260_v23  ;;  %vm413_vm2 = vcmp.eq.s32.totalorder %v408_v48, 2  ;;  %vm409_vm3 = vcmp.lt.s32.totalorder %v408_v48, 2  ;;  %801 = vmatpush.msra.mxu1 %v776_v18 }
  0xed   :  { %v262_v26 = vsel %vm251_vm0, nan, %v261_v42  ;;  %v393_v44 = vadd.f32 0.041655596, %v392_v27  ;;  %v400_v29 = vadd.f32 0.008332121, %v399_v28 }
  0xee   :  { %1205 = vmatmul.msk.f32.vlgmr.msra.gmra.mxu0 %vm430_vm15, %v262_v26  ;;  %v775_v26 = vld [vmem:[#allocation2 + $0x18] sm:$0xff] }
  0xef   :  { %v394_v31 = vmul.f32 %v393_v44, %v391_v25  ;;  %v401_v35 = vmul.f32 %v400_v29, %v391_v25  ;;  %802 = vmatpush.msra.mxu1 %v775_v26 }
  0xf1   :  { %v395_v36 = vadd.f32 -0.4999988, %v394_v31  ;;  %v402_v38 = vadd.f32 -0.16666654, %v401_v35  ;;  %803 = vmatpush.msra.mxu1 %v774_v30 }
  0xf3   :  { %v396_v40 = vmul.f32 %v395_v36, %v391_v25  ;;  %v403_v56 = vmul.f32 %v402_v38, %v391_v25 }
  0xf5   :  { %v397_v43 = vadd.f32 1.0, %v396_v40  ;;  %v404_v47 = vadd.f32 1.0, %v403_v56 }
  0xf7   :  { %v405_v49 = vmul.f32 %v404_v47, %v389_v24  ;;  %v414_v50 = vxor.u32 2147483648, %v397_v43 }
  0xf9   :  { %v411_v19 = vxor.u32 2147483648, %v405_v49  ;;  %v415_v41 = vsel %vm413_vm2, %v414_v50, %v405_v49 }
  0xfb   :  { %v412_v21 = vsel %vm410_vm1, %v397_v43, %v411_v19  ;;  %v773_v43 = vld [vmem:[#allocation2 + $0x8] sm:$0xff] }
  0xfc   :  { %v416_v51 = vsel %vm409_vm3, %v412_v21, %v415_v41  ;;  %804 = vmatpush.msra.mxu1 %v773_v43 }
  0xfd   :  { %v417_v53 = vsel %vm406_vm4, nan, %v416_v51 }
  0xfe   :  { %1206 = vmatmul.msk.f32.vlgmr.msra.gmra.mxu3 %vm430_vm15, %v417_v53  ;;  %v772_v53 = vld [vmem:[#allocation2] sm:$0xff] }
  0xff   :  { %805 = vmatpush.msra.mxu1 %v772_v53 }
 0x16b   :  { %v454_v54 = vpop.f32.mrf.mxu0 }
 0x16c   :  { %v455_v55 = vadd.f32 %v1253_v61, %v454_v54 }
 0x16e   :  { %v1596_v57 = vmul.f32 %v1405_v32, %v455_v55 }
 0x170   :  { %v465_v58 = vand.u32 2139095040, %v1596_v57  ;;  %v462_v3 = vand.u32 2147483647, %v1596_v57 }
 0x172   :  { %v466_v33 = vshrl.u32 %v465_v58, 23  ;;  %v469_v46 = vand.u32 8388607, %v462_v3 }
 0x174   :  { %v1207_v45 = vadd.s32 4294967169, %v466_v33  ;;  %v470_v12 = vor.u32 8388608, %v469_v46 }
 0x176   :  { %v472_v37 = vadd.s32 1, %v1207_v45  ;;  %v1615_v34 = vshll.u32 %v470_v12, 8 }
 0x178   :  { %vm473_vm5 = vcmp.gt.s32.totalorder %v472_v37, 0  ;;  %v512_v48 = vshrl.u32 %v1615_v34, 16  ;;  %v511_v50 = vand.u32 65535, %v1615_v34 }
 0x179   :  { %v474_v52 = vsel %vm473_vm5, %v472_v37, 0 }
 0x17a   :  { %v476_v4 = vand.u32 31, %v474_v52  ;;  %v1602_v6 = vshrl.u32 %v474_v52, 5 }
 0x17c   :  { %v477_v1 = vsub.s32 32, %v476_v4  ;;  %v488_v7 = vshll.u32 %v1295_v8, %v476_v4  ;;  %v491_v10 = vshll.u32 %v1296_v11, %v476_v4  ;;  %v479_v17 = vshll.u32 %v1292_v63, %v476_v4 }
 0x17d   :  { %v482_v22 = vshll.u32 %v1293_v2, %v476_v4  ;;  %v485_v23 = vshll.u32 %v1294_v5, %v476_v4  ;;  %vm497_vm6 = vcmp.lt.s32.totalorder %v1602_v6, 4  ;;  %vm494_vm7 = vcmp.lt.s32.totalorder %v1602_v6, 1 }
 0x17e   :  { %v489_v13 = vshrl.u32 %v1296_v11, %v477_v1  ;;  %v492_v15 = vshrl.u32 %v1297_v14, %v477_v1  ;;  %v480_v20 = vshrl.u32 %v1293_v2, %v477_v1  ;;  %v483_v59 = vshrl.u32 %v1294_v5, %v477_v1 }
 0x17f   :  { %v486_v60 = vshrl.u32 %v1295_v8, %v477_v1  ;;  %vm496_vm8 = vcmp.lt.s32.totalorder %v1602_v6, 3  ;;  %vm495_vm9 = vcmp.lt.s32.totalorder %v1602_v6, 2  ;;  %v478_v54 = vshrl.u32 %v1292_v63, %v477_v1 }
 0x180   :  { %v490_v24 = vor.u32 %v489_v13, %v488_v7  ;;  %v493_v42 = vor.u32 %v492_v15, %v491_v10  ;;  %v481_v25 = vor.u32 %v480_v20, %v479_v17  ;;  %v484_v27 = vor.u32 %v483_v59, %v482_v22 }
 0x181   :  { %v487_v28 = vor.u32 %v486_v60, %v485_v23  ;;  %v457_v38 = vpop.f32.mrf.mxu3 }
 0x182   :  { %v503_v44 = vsel %vm497_vm6, %v490_v24, 920167782  ;;  %v507_v29 = vsel %vm497_vm6, %v493_v42, 1326507024  ;;  %v502_v31 = vsel %vm494_vm7, %v481_v25, %v484_v27  ;;  %v458_v56 = vadd.f32 %v1253_v61, %v457_v38 }
 0x183   :  { %v504_v35 = vsel %vm496_vm8, %v487_v28, %v503_v44  ;;  %v506_v36 = vsel %vm494_vm7, %v484_v27, %v487_v28  ;;  %v508_v40 = vsel %vm496_vm8, %v490_v24, %v507_v29  ;;  %v498_v45 = vsel %vm494_vm7, %v478_v54, %v481_v25 }
 0x184   :  { %v505_v39 = vsel %vm495_vm9, %v502_v31, %v504_v35  ;;  %v509_v47 = vsel %vm495_vm9, %v506_v36, %v508_v40  ;;  %v1639_v51 = vmul.f32 %v1405_v32, %v458_v56  ;;  %v499_v37 = vsel %vm497_vm6, %v487_v28, 2102212464 }
 0x185   :  { %v535_v49 = vand.u32 65535, %v505_v39  ;;  %v513_v19 = vand.u32 65535, %v509_v47  ;;  %v514_v21 = vshrl.u32 %v509_v47, 16  ;;  %v536_v41 = vshrl.u32 %v505_v39, 16 }
 0x186   :  { %v620_v33 = vand.u32 2139095040, %v1639_v51  ;;  %v617_v13 = vand.u32 2147483647, %v1639_v51  ;;  %v500_v18 = vsel %vm496_vm8, %v484_v27, %v499_v37 }
 0x187   :  { %v539_v61 = vmul.u32 %v535_v49, %v512_v48  ;;  %v516_v55 = vmul.u32 %v514_v21, %v511_v50  ;;  %v517_v58 = vmul.u32 %v513_v19, %v512_v48  ;;  %v538_v52 = vmul.u32 %v536_v41, %v511_v50 }
 0x188   :  { %v515_v46 = vmul.u32 %v513_v19, %v511_v50  ;;  %v518_v32 = vmul.u32 %v514_v21, %v512_v48  ;;  %v537_v16 = vmul.u32 %v535_v49, %v511_v50  ;;  %v621_v62 = vshrl.u32 %v620_v33, 23 }
 0x189   :  { %v519_v4 = vshll.u32 %v516_v55, 16  ;;  %v540_v1 = vmul.u32 %v536_v41, %v512_v48  ;;  %v541_v7 = vshll.u32 %v538_v52, 16  ;;  %v543_v10 = vshll.u32 %v539_v61, 16 }
 0x18a   :  { %v521_v9 = vshll.u32 %v517_v58, 16  ;;  %v1210_v15 = vadd.s32 4294967169, %v621_v62  ;;  %v520_v42 = vshrl.u32 %v516_v55, 16  ;;  %v624_v28 = vand.u32 8388607, %v617_v13 }
 0x18b   :  { %vm523_vm10 = vc.u32 %v515_v46, %v519_v4  ;;  %v525_v12 = vadd.s32 %v519_v4, %v515_v46  ;;  %vm545_vm11 = vc.u32 %v537_v16, %v541_v7  ;;  %v547_v20 = vadd.s32 %v541_v7, %v537_v16 }
 0x18c   :  { %v524_v17 = vsel %vm523_vm10, 1, %v1289_v0  ;;  %v546_v59 = vsel %vm545_vm11, 1, %v1289_v0  ;;  %v627_v23 = vadd.s32 1, %v1210_v15  ;;  %v501_v27 = vsel %vm495_vm9, %v498_v45, %v500_v18 }
 0x18d   :  { %v526_v22 = vadd.s32 %v524_v17, %v518_v32  ;;  %vm527_vm12 = vc.u32 %v525_v12, %v521_v9  ;;  %v548_v24 = vadd.s32 %v546_v59, %v540_v1  ;;  %vm549_vm13 = vc.u32 %v547_v20, %v543_v10 }
 0x18e   :  { %v528_v60 = vsel %vm527_vm12, 1, %v1289_v0  ;;  %v550_v26 = vsel %vm549_vm13, 1, %v1289_v0  ;;  %vm628_vm14 = vcmp.gt.s32.totalorder %v627_v23, 0  ;;  %v542_v44 = vshrl.u32 %v538_v52, 16 }
 0x18f   :  { %v530_v25 = vadd.s32 %v528_v60, %v526_v22  ;;  %v552_v29 = vadd.s32 %v550_v26, %v548_v24  ;;  %v629_v30 = vsel %vm628_vm14, %v627_v23, 0  ;;  %v522_v31 = vshrl.u32 %v517_v58, 16 }
 0x190   :  { %v625_v36 = vor.u32 8388608, %v624_v28  ;;  %v631_v38 = vand.u32 31, %v629_v30  ;;  %v544_v56 = vshrl.u32 %v539_v61, 16  ;;  %v1660_v43 = vadd.s32 %v547_v20, %v543_v10 }
 0x191   :  { %v531_v35 = vadd.s32 %v530_v25, %v520_v42  ;;  %v553_v39 = vadd.s32 %v552_v29, %v542_v44  ;;  %v1662_v47 = vshrl.u32 %v629_v30, 5  ;;  %v555_v6 = vmul.u32 %v1615_v34, %v501_v27 }
 0x192   :  { %v1664_v48 = vsub.s32 32, %v631_v38  ;;  %v1667_v49 = vshll.u32 %v625_v36, 8  ;;  %v643_v50 = vshll.u32 %v1295_v8, %v631_v38  ;;  %v646_v19 = vshll.u32 %v1296_v11, %v631_v38 }
 0x193   :  { %v1658_v40 = vadd.s32 %v531_v35, %v522_v31  ;;  %v554_v21 = vadd.s32 %v553_v39, %v544_v56  ;;  %v634_v54 = vshll.u32 %v1292_v63, %v631_v38  ;;  %v637_v55 = vshll.u32 %v1293_v2, %v631_v38 }
 0x194   :  { %v644_v41 = vshrl.u32 %v1296_v11, %v1664_v48  ;;  %v647_v53 = vshrl.u32 %v1297_v14, %v1664_v48  ;;  %v635_v34 = vshrl.u32 %v1293_v2, %v1664_v48  ;;  %v638_v58 = vshrl.u32 %v1294_v5, %v1664_v48 }
 0x195   :  { %vm557_vm0 = vc.u32 %v1658_v40, %v1660_v43  ;;  %v558_v61 = vadd.s32 1, %v554_v21  ;;  %v640_v33 = vshll.u32 %v1294_v5, %v631_v38  ;;  %v641_v46 = vshrl.u32 %v1295_v8, %v1664_v48 }
 0x196   :  { %v645_v45 = vor.u32 %v644_v41, %v643_v50  ;;  %v648_v37 = vor.u32 %v647_v53, %v646_v19  ;;  %v1684_v52 = vor.u32 %v635_v34, %v634_v54  ;;  %vm652_vm1 = vcmp.lt.s32.totalorder %v1662_v47, 4 }
 0x197   :  { %v559_v32 = vsel %vm557_vm0, %v558_v61, %v554_v21  ;;  %v1689_v4 = vor.u32 %v638_v58, %v637_v55  ;;  %vm649_vm2 = vcmp.lt.s32.totalorder %v1662_v47, 1  ;;  %v642_v7 = vor.u32 %v641_v46, %v640_v33 }
 0x198   :  { %v658_v16 = vsel %vm652_vm1, %v645_v45, 920167782  ;;  %v662_v62 = vsel %vm652_vm1, %v648_v37, 1326507024  ;;  %v560_v1 = vadd.s32 %v559_v32, %v555_v6  ;;  %vm651_vm3 = vcmp.lt.s32.totalorder %v1662_v47, 3 }
 0x199   :  { %v657_v10 = vsel %vm649_vm2, %v1684_v52, %v1689_v4  ;;  %vm650_vm4 = vcmp.lt.s32.totalorder %v1662_v47, 2  ;;  %v659_v12 = vsel %vm651_vm3, %v642_v7, %v658_v16  ;;  %v661_v15 = vsel %vm649_vm2, %v1689_v4, %v642_v7 }
 0x19a   :  { %v561_v9 = vadd.s32 536870912, %v560_v1  ;;  %v660_v17 = vsel %vm650_vm4, %v657_v10, %v659_v12  ;;  %v663_v20 = vsel %vm651_vm3, %v645_v45, %v662_v62  ;;  %v666_v59 = vand.u32 65535, %v1667_v49 }
 0x19b   :  { %v664_v22 = vsel %vm650_vm4, %v661_v15, %v663_v20  ;;  %v667_v23 = vshrl.u32 %v1667_v49, 16  ;;  %v691_v42 = vshrl.u32 %v660_v17, 16  ;;  %v690_v26 = vand.u32 65535, %v660_v17 }
 0x19c   :  { %v1711_v18 = vshrl.u32 %v561_v9, 30  ;;  %v668_v60 = vand.u32 65535, %v664_v22  ;;  %v669_v24 = vshrl.u32 %v664_v22, 16  ;;  %v654_v37 = vsel %vm652_vm1, %v642_v7, 2102212464 }
 0x19d   :  { %v693_v29 = vmul.u32 %v691_v42, %v666_v59  ;;  %v694_v38 = vmul.u32 %v690_v26, %v667_v23  ;;  %v692_v53 = vmul.u32 %v690_v26, %v666_v59  ;;  %v695_v61 = vmul.u32 %v691_v42, %v667_v23 }
 0x19e   :  { %v563_v25 = vshll.u32 %v1711_v18, 30  ;;  %v671_v28 = vmul.u32 %v669_v24, %v666_v59  ;;  %v672_v27 = vmul.u32 %v668_v60, %v667_v23  ;;  %v670_v30 = vmul.u32 %v668_v60, %v666_v59 }
 0x19f   :  { %v673_v36 = vmul.u32 %v669_v24, %v667_v23  ;;  %v696_v6 = vshll.u32 %v693_v29, 16  ;;  %v698_v55 = vshll.u32 %v694_v38, 16  ;;  %v556_v9 = vadd.s32 %v1660_v43, %v1658_v40 }
 0x1a0   :  { %v564_v44 = vsub.s32 %v560_v1, %v563_v25  ;;  %v674_v31 = vshll.u32 %v671_v28, 16  ;;  %v676_v39 = vshll.u32 %v672_v27, 16  ;;  %v675_v54 = vshrl.u32 %v671_v28, 16 }
 0x1a1   :  { %vm700_vm8 = vc.u32 %v692_v53, %v696_v6  ;;  %v702_v45 = vadd.s32 %v696_v6, %v692_v53  ;;  %v633_v1 = vshrl.u32 %v1292_v63, %v1664_v48  ;;  %v677_v17 = vshrl.u32 %v672_v27, 16 }
 0x1a2   :  { %vm565_vm5 = vcmp.lt.s32.totalorder %v564_v44, 0  ;;  %v566_v35 = vsub.s32 0, %v564_v44  ;;  %vm678_vm6 = vc.u32 %v670_v30, %v674_v31  ;;  %v680_v56 = vadd.s32 %v674_v31, %v670_v30 }
 0x1a3   :  { %v679_v19 = vsel %vm678_vm6, 1, %v1289_v0  ;;  %v701_v46 = vsel %vm700_vm8, 1, %v1289_v0  ;;  %vm704_vm10 = vc.u32 %v702_v45, %v698_v55  ;;  %v653_v7 = vsel %vm649_vm2, %v633_v1, %v1684_v52 }
 0x1a4   :  { %v567_v50 = vsel %vm565_vm5, %v566_v35, %v564_v44  ;;  %v681_v41 = vadd.s32 %v679_v19, %v673_v36  ;;  %vm682_vm7 = vc.u32 %v680_v56, %v676_v39  ;;  %v703_v16 = vadd.s32 %v701_v46, %v695_v61 }
 0x1a5   :  { %v568_v21 = vclz %v567_v50  ;;  %v683_v34 = vsel %vm682_vm7, 1, %v1289_v0  ;;  %v705_v10 = vsel %vm704_vm10, 1, %v1289_v0  ;;  %v655_v20 = vsel %vm651_vm3, %v1689_v4, %v654_v37 }
 0x1a6   :  { %v685_v33 = vadd.s32 %v683_v34, %v681_v41  ;;  %v697_v22 = vshrl.u32 %v693_v29, 16  ;;  %v707_v59 = vadd.s32 %v705_v10, %v703_v16  ;;  %v699_v42 = vshrl.u32 %v694_v38, 16 }
 0x1a7   :  { %v1208_v58 = vadd.s32 4294967294, %v568_v21  ;;  %v706_v26 = vadd.s32 %v702_v45, %v698_v55  ;;  %v656_v28 = vsel %vm650_vm4, %v653_v7, %v655_v20  ;;  %vm464_vm12 = vcmp.lt.s32.totalorder %v1596_v57, 0 }
 0x1a8   :  { %v686_v32 = vadd.s32 %v685_v33, %v675_v54  ;;  %v708_v25 = vadd.s32 %v707_v59, %v697_v22  ;;  %v710_v29 = vmul.u32 %v1667_v49, %v656_v28  ;;  %vm1740_vm13 = vcmp.le.f32.partialorder %v462_v3, 0.7853982 }
 0x1a9   :  { %vm1209_vm9 = vcmp.lt.s32.totalorder %v1208_v58, 0  ;;  %v586_v50 = vsub.s32 4, %v1711_v18  ;;  %vm605_vm4 = vweird.f32 %v1596_v57  ;;  %vm619_vm5 = vcmp.lt.s32.totalorder %v1639_v51, 0 }
 0x1aa   :  { %v571_v62 = vsel %vm1209_vm9, 0, %v1208_v58  ;;  %v687_v24 = vadd.s32 %v686_v32, %v677_v17  ;;  %v709_v27 = vadd.s32 %v708_v25, %v699_v42  ;;  %vm618_vm6 = vcmp.le.f32.partialorder %v617_v13, 0.7853982 }
 0x1ab   :  { %v572_v12 = vsub.s32 32, %v571_v62  ;;  %v576_v15 = vsub.s32 4294967266, %v571_v62  ;;  %v573_v23 = vshll.u32 %v564_v44, %v571_v62  ;;  %v587_v3 = vsel %vm464_vm12, %v586_v50, %v1711_v18 }
 0x1ac   :  { %vm712_vm11 = vc.u32 %v687_v24, %v706_v26  ;;  %v713_v30 = vadd.s32 1, %v709_v27  ;;  %v589_v58 = vsel %vm1740_vm13, 0, %v587_v3  ;;  %v711_v7 = vadd.s32 %v706_v26, %v687_v24 }
 0x1ad   :  { %v574_v48 = vshrl.u32 %v556_v9, %v572_v12  ;;  %v577_v60 = vadd.s32 127, %v576_v15  ;;  %v606_v62 = vadd.s32 3, %v589_v58  ;;  %vm760_vm10 = vweird.f32 %v1639_v51 }
 0x1ae   :  { %v714_v44 = vsel %vm712_vm11, %v713_v30, %v709_v27 }
 0x1af   :  { %v575_v40 = vor.u32 %v574_v48, %v573_v23  ;;  %v578_v43 = vshll.u32 %v577_v60, 23  ;;  %v715_v36 = vadd.s32 %v714_v44, %v710_v29  ;;  %v607_v17 = vand.u32 3, %v606_v62 }
 0x1b1   :  { %v579_v52 = vor.u32 4788187, %v578_v43  ;;  %v582_v4 = vcvt.s32.f32 %v575_v40  ;;  %v716_v38 = vadd.s32 536870912, %v715_v36  ;;  %vm609_vm1 = vcmp.eq.s32.totalorder %v607_v17, 0 }
 0x1b2   :  { %vm612_vm2 = vcmp.eq.s32.totalorder %v607_v17, 2  ;;  %vm608_vm3 = vcmp.lt.s32.totalorder %v607_v17, 2 }
 0x1b3   :  { %v580_v31 = vand.u32 2147483647, %v579_v52  ;;  %v1744_v6 = vshrl.u32 %v716_v38, 30 }
 0x1b5   :  { %v583_v35 = vmul.f32 %v582_v4, %v580_v31  ;;  %v718_v21 = vshll.u32 %v1744_v6, 30 }
 0x1b7   :  { %v584_v39 = vxor.u32 2147483648, %v583_v35  ;;  %v719_v54 = vsub.s32 %v715_v36, %v718_v21 }
 0x1b9   :  { %v585_v56 = vsel %vm464_vm12, %v584_v39, %v583_v35  ;;  %vm720_vm14 = vcmp.lt.s32.totalorder %v719_v54, 0  ;;  %v721_v55 = vsub.s32 0, %v719_v54  ;;  %v741_v35 = vsub.s32 4, %v1744_v6 }
 0x1ba   :  { %v588_v49 = vsel %vm1740_vm13, %v1596_v57, %v585_v56 }
 0x1bb   :  { %v590_v19 = vmul.f32 %v588_v49, %v588_v49  ;;  %v722_v37 = vsel %vm720_vm14, %v721_v55, %v719_v54  ;;  %v742_v47 = vsel %vm619_vm5, %v741_v35, %v1744_v6 }
 0x1bc   :  { %v723_v46 = vclz %v722_v37 }
 0x1bd   :  { %v591_v41 = vmul.f32 -0.001358992, %v590_v19  ;;  %v598_v53 = vmul.f32 -0.00019511016, %v590_v19 }
 0x1be   :  { %v1211_v1 = vadd.s32 4294967294, %v723_v46 }
 0x1bf   :  { %v592_v34 = vadd.f32 0.041655596, %v591_v41  ;;  %v599_v61 = vadd.f32 0.008332121, %v598_v53 }
 0x1c0   :  { %vm1212_vm0 = vcmp.lt.s32.totalorder %v1211_v1, 0 }
 0x1c1   :  { %v593_v33 = vmul.f32 %v592_v34, %v590_v19  ;;  %v600_v45 = vmul.f32 %v599_v61, %v590_v19  ;;  %v726_v15 = vsel %vm1212_vm0, 0, %v1211_v1 }
 0x1c2   :  { %v727_v20 = vsub.s32 32, %v726_v15  ;;  %v731_v22 = vsub.s32 4294967266, %v726_v15  ;;  %v728_v48 = vshll.u32 %v719_v54, %v726_v15 }
 0x1c3   :  { %v594_v32 = vadd.f32 -0.4999988, %v593_v33  ;;  %v601_v16 = vadd.f32 -0.16666654, %v600_v45 }
 0x1c4   :  { %v729_v60 = vshrl.u32 %v711_v7, %v727_v20  ;;  %v732_v42 = vadd.s32 127, %v731_v22 }
 0x1c5   :  { %v595_v10 = vmul.f32 %v594_v32, %v590_v19  ;;  %v602_v9 = vmul.f32 %v601_v16, %v590_v19  ;;  %v1767_v16 = vld [vmem:[%s1996_s8] ss:$0 sm:$0xff] }
 0x1c6   :  { %v730_v40 = vor.u32 %v729_v60, %v728_v48  ;;  %v733_v43 = vshll.u32 %v732_v42, 23 }
 0x1c7   :  { %v596_v12 = vadd.f32 1.0, %v595_v10  ;;  %v603_v18 = vadd.f32 1.0, %v602_v9  ;;  %v1773_v10 = vld [vmem:[%s1992_s4] ss:$0 sm:$0xff] }
 0x1c8   :  { %v734_v30 = vor.u32 4788187, %v733_v43  ;;  %v737_v31 = vcvt.s32.f32 %v730_v40 }
 0x1c9   :  { %v604_v59 = vmul.f32 %v603_v18, %v588_v49  ;;  %v613_v23 = vxor.u32 2147483648, %v596_v12  ;;  %v744_v49 = vsel %vm618_vm6, 0, %v742_v47 }
 0x1ca   :  { %v735_v26 = vand.u32 2147483647, %v734_v30  ;;  %v761_v54 = vadd.s32 3, %v744_v49 }
 0x1cb   :  { %v610_v25 = vxor.u32 2147483648, %v604_v59  ;;  %v614_v27 = vsel %vm612_vm2, %v613_v23, %v604_v59 }
 0x1cc   :  { %v738_v4 = vmul.f32 %v737_v31, %v735_v26  ;;  %v762_v55 = vand.u32 3, %v761_v54  ;;  %v1128_v54 = vld [vmem:[%s1997_s9 + $0x18] sm:$0xff] }
 0x1cd   :  { %v611_v28 = vsel %vm609_vm1, %v596_v12, %v610_v25 }
 0x1ce   :  { %v615_v52 = vsel %vm608_vm3, %v611_v28, %v614_v27  ;;  %v739_v29 = vxor.u32 2147483648, %v738_v4  ;;  %vm764_vm7 = vcmp.eq.s32.totalorder %v762_v55, 0  ;;  %vm767_vm8 = vcmp.eq.s32.totalorder %v762_v55, 2  ;;  %v1132_v27 = vld [vmem:[%s1997_s9 + $0x38] sm:$0xff] }
 0x1cf   :  { %v616_v24 = vsel %vm605_vm4, nan, %v615_v52  ;;  %vm763_vm9 = vcmp.lt.s32.totalorder %v762_v55, 2  ;;  %v1131_v52 = vld [vmem:[%s1997_s9 + $0x30] sm:$0xff]  ;;  %1147 = vmatpush.msra.mxu2 %v1132_v27 }
 0x1d0   :  { %1213 = vmatmul.msk.f32.vlgmr.msra.gmra.mxu1 %vm430_vm15, %v616_v24  ;;  %v740_v44 = vsel %vm619_vm5, %v739_v29, %v738_v4 }
 0x1d1   :  { %v743_v36 = vsel %vm618_vm6, %v1639_v51, %v740_v44  ;;  %1148 = vmatpush.msra.mxu2 %v1131_v52 }
 0x1d2   :  { %v745_v57 = vmul.f32 %v743_v36, %v743_v36 }
 0x1d4   :  { %v746_v39 = vmul.f32 -0.001358992, %v745_v57  ;;  %v753_v38 = vmul.f32 -0.00019511016, %v745_v57 }
 0x1d6   :  { %v747_v56 = vadd.f32 0.041655596, %v746_v39  ;;  %v754_v50 = vadd.f32 0.008332121, %v753_v38 }
 0x1d8   :  { %v748_v19 = vmul.f32 %v747_v56, %v745_v57  ;;  %v755_v21 = vmul.f32 %v754_v50, %v745_v57  ;;  %v1129_v56 = vld [vmem:[%s1997_s9 + $0x20] sm:$0xff] }
 0x1da   :  { %v749_v41 = vadd.f32 -0.4999988, %v748_v19  ;;  %v756_v53 = vadd.f32 -0.16666654, %v755_v21 }
 0x1dc   :  { %v750_v3 = vmul.f32 %v749_v41, %v745_v57  ;;  %v757_v13 = vmul.f32 %v756_v53, %v745_v57 }
 0x1de   :  { %v751_v34 = vadd.f32 1.0, %v750_v3  ;;  %v758_v61 = vadd.f32 1.0, %v757_v13 }
 0x1e0   :  { %v759_v58 = vmul.f32 %v758_v61, %v743_v36  ;;  %v768_v33 = vxor.u32 2147483648, %v751_v34  ;;  %v1130_v36 = vld [vmem:[%s1997_s9 + $0x28] sm:$0xff] }
 0x1e1   :  { %1149 = vmatpush.msra.mxu2 %v1130_v36 }
 0x1e2   :  { %v765_v45 = vxor.u32 2147483648, %v759_v58  ;;  %v769_v37 = vsel %vm767_vm8, %v768_v33, %v759_v58  ;;  %v1127_v33 = vld [vmem:[%s1997_s9 + $0x10] sm:$0xff] }
 0x1e3   :  { %1150 = vmatpush.msra.mxu2 %v1129_v56 }
 0x1e4   :  { %v766_v6 = vsel %vm764_vm7, %v751_v34, %v765_v45 }
 0x1e5   :  { %v770_v46 = vsel %vm763_vm9, %v766_v6, %v769_v37  ;;  %1151 = vmatpush.msra.mxu2 %v1128_v54 }
 0x1e6   :  { %v771_v32 = vsel %vm760_vm10, nan, %v770_v46 }
 0x1e7   :  { %1214 = vmatmul.msk.f32.gmra.mxu1 %vm430_vm15, %v771_v32  ;;  %1152 = vmatpush.msra.mxu2 %v1127_v33 }
 0x24d   :  { %v807_v62 = vpop.f32.mrf.mxu1 }
 0x24e   :  { %v808_v1 = vadd.f32 %v1767_v16, %v807_v62 }
 0x250   :  { %v1776_v9 = vmul.f32 %v1773_v10, %v808_v1  ;;  %v1126_v1 = vld [vmem:[%s1997_s9 + $0x8] sm:$0xff] }
 0x251   :  { %1153 = vmatpush.msra.mxu2 %v1126_v1 }
 0x252   :  { %v818_v51 = vand.u32 2139095040, %v1776_v9  ;;  %v815_v15 = vand.u32 2147483647, %v1776_v9 }
 0x254   :  { %v819_v12 = vshrl.u32 %v818_v51, 23  ;;  %v822_v7 = vand.u32 8388607, %v815_v15 }
 0x256   :  { %v1215_v18 = vadd.s32 4294967169, %v819_v12  ;;  %v823_v23 = vor.u32 8388608, %v822_v7 }
 0x258   :  { %v825_v17 = vadd.s32 1, %v1215_v18  ;;  %v1809_v35 = vshll.u32 %v823_v23, 8 }
 0x25a   :  { %vm826_vm11 = vcmp.gt.s32.totalorder %v825_v17, 0  ;;  %v864_v53 = vand.u32 65535, %v1809_v35  ;;  %v865_v13 = vshrl.u32 %v1809_v35, 16 }
 0x25b   :  { %v827_v20 = vsel %vm826_vm11, %v825_v17, 0 }
 0x25c   :  { %v829_v22 = vand.u32 31, %v827_v20  ;;  %v1784_v48 = vshrl.u32 %v827_v20, 5 }
 0x25e   :  { %v1782_v59 = vsub.s32 32, %v829_v22  ;;  %v841_v60 = vshll.u32 %v1295_v8, %v829_v22  ;;  %v844_v42 = vshll.u32 %v1296_v11, %v829_v22  ;;  %v832_v43 = vshll.u32 %v1292_v63, %v829_v22 }
 0x25f   :  { %v835_v30 = vshll.u32 %v1293_v2, %v829_v22  ;;  %v838_v26 = vshll.u32 %v1294_v5, %v829_v22  ;;  %vm850_vm12 = vcmp.lt.s32.totalorder %v1784_v48, 4  ;;  %vm847_vm13 = vcmp.lt.s32.totalorder %v1784_v48, 1 }
 0x260   :  { %v842_v25 = vshrl.u32 %v1296_v11, %v1782_v59  ;;  %v845_v40 = vshrl.u32 %v1297_v14, %v1782_v59  ;;  %v833_v28 = vshrl.u32 %v1293_v2, %v1782_v59  ;;  %v836_v24 = vshrl.u32 %v1294_v5, %v1782_v59 }
 0x261   :  { %v839_v31 = vshrl.u32 %v1295_v8, %v1782_v59  ;;  %vm849_vm14 = vcmp.lt.s32.totalorder %v1784_v48, 3  ;;  %vm848_vm0 = vcmp.lt.s32.totalorder %v1784_v48, 2 }
 0x262   :  { %v843_v4 = vor.u32 %v842_v25, %v841_v60  ;;  %v846_v29 = vor.u32 %v845_v40, %v844_v42  ;;  %v1807_v44 = vor.u32 %v833_v28, %v832_v43  ;;  %v1815_v57 = vor.u32 %v836_v24, %v835_v30 }
 0x263   :  { %v840_v39 = vor.u32 %v839_v31, %v838_v26 }
 0x264   :  { %v856_v38 = vsel %vm850_vm12, %v843_v4, 920167782  ;;  %v860_v47 = vsel %vm850_vm12, %v846_v29, 1326507024  ;;  %v855_v50 = vsel %vm847_vm13, %v1807_v44, %v1815_v57  ;;  %v810_v37 = vpop.f32.mrf.mxu1 }
 0x265   :  { %v857_v49 = vsel %vm849_vm14, %v840_v39, %v856_v38  ;;  %v859_v19 = vsel %vm847_vm13, %v1815_v57, %v840_v39  ;;  %v861_v41 = vsel %vm849_vm14, %v843_v4, %v860_v47  ;;  %v811_v62 = vadd.f32 %v1767_v16, %v810_v37  ;;  %v1125_v16 = vld [vmem:[%s1997_s9] sm:$0xff] }
 0x266   :  { %v858_v21 = vsel %vm848_vm0, %v855_v50, %v857_v49  ;;  %v862_v3 = vsel %vm848_vm0, %v859_v19, %v861_v41  ;;  %v852_v51 = vsel %vm850_vm12, %v840_v39, 2102212464  ;;  %1154 = vmatpush.msra.mxu2 %v1125_v16 }
 0x267   :  { %v888_v34 = vand.u32 65535, %v858_v21  ;;  %v889_v61 = vshrl.u32 %v858_v21, 16  ;;  %v866_v55 = vand.u32 65535, %v862_v3  ;;  %v867_v58 = vshrl.u32 %v862_v3, 16 }
 0x268   :  { %v1857_v23 = vmul.f32 %v1773_v10, %v811_v62  ;;  %v831_v10 = vshrl.u32 %v1292_v63, %v1782_v59  ;;  %v853_v39 = vsel %vm849_vm14, %v1815_v57, %v852_v51 }
 0x269   :  { %v891_v45 = vmul.u32 %v889_v61, %v864_v53  ;;  %v892_v6 = vmul.u32 %v888_v34, %v865_v13  ;;  %v869_v46 = vmul.u32 %v867_v58, %v864_v53  ;;  %v870_v32 = vmul.u32 %v866_v55, %v865_v13 }
 0x26a   :  { %v890_v12 = vmul.u32 %v888_v34, %v864_v53  ;;  %v868_v17 = vmul.u32 %v866_v55, %v864_v53  ;;  %v871_v7 = vmul.u32 %v867_v58, %v865_v13  ;;  %v893_v22 = vmul.u32 %v889_v61, %v865_v13 }
 0x26b   :  { %v894_v18 = vshll.u32 %v891_v45, 16  ;;  %v872_v20 = vshll.u32 %v869_v46, 16  ;;  %v896_v60 = vshll.u32 %v892_v6, 16  ;;  %v874_v25 = vshll.u32 %v870_v32, 16 }
 0x26c   :  { %v973_v28 = vand.u32 2139095040, %v1857_v23  ;;  %v895_v4 = vshrl.u32 %v891_v45, 16  ;;  %v851_v36 = vsel %vm847_vm13, %v831_v10, %v1807_v44  ;;  %v873_v38 = vshrl.u32 %v869_v46, 16 }
 0x26d   :  { %vm898_vm1 = vc.u32 %v890_v12, %v894_v18  ;;  %v900_v42 = vadd.s32 %v894_v18, %v890_v12  ;;  %vm876_vm2 = vc.u32 %v868_v17, %v872_v20  ;;  %v878_v40 = vadd.s32 %v872_v20, %v868_v17 }
 0x26e   :  { %v899_v43 = vsel %vm898_vm1, 1, %v1289_v0  ;;  %v877_v27 = vsel %vm876_vm2, 1, %v1289_v0  ;;  %v974_v26 = vshrl.u32 %v973_v28, 23  ;;  %v897_v56 = vshrl.u32 %v892_v6, 16 }
 0x26f   :  { %v901_v52 = vadd.s32 %v899_v43, %v893_v22  ;;  %vm902_vm3 = vc.u32 %v900_v42, %v896_v60  ;;  %v879_v30 = vadd.s32 %v877_v27, %v871_v7  ;;  %vm880_vm4 = vc.u32 %v878_v40, %v874_v25 }
 0x270   :  { %v903_v24 = vsel %vm902_vm3, 1, %v1289_v0  ;;  %v881_v31 = vsel %vm880_vm4, 1, %v1289_v0  ;;  %v1218_v59 = vadd.s32 4294967169, %v974_v26  ;;  %v970_v49 = vand.u32 2147483647, %v1857_v23 }
 0x271   :  { %v905_v29 = vadd.s32 %v903_v24, %v901_v52  ;;  %v883_v47 = vadd.s32 %v881_v31, %v879_v30  ;;  %v875_v19 = vshrl.u32 %v870_v32, 16  ;;  %v854_v53 = vsel %vm848_vm0, %v851_v36, %v853_v39 }
 0x272   :  { %v980_v41 = vadd.s32 1, %v1218_v59  ;;  %v904_v44 = vadd.s32 %v900_v42, %v896_v60  ;;  %v977_v57 = vand.u32 8388607, %v970_v49  ;;  %v908_v61 = vmul.u32 %v1809_v35, %v854_v53 }
 0x273   :  { %v906_v50 = vadd.s32 %v905_v29, %v895_v4  ;;  %v884_v21 = vadd.s32 %v883_v47, %v873_v38  ;;  %vm817_vm3 = vcmp.lt.s32.totalorder %v1776_v9, 0  ;;  %vm1956_vm4 = vcmp.le.f32.partialorder %v815_v15, 0.7853982 }
 0x274   :  { %vm981_vm5 = vcmp.gt.s32.totalorder %v980_v41, 0  ;;  %v978_v48 = vor.u32 8388608, %v977_v57 }
 0x275   :  { %v907_v54 = vadd.s32 %v906_v50, %v897_v56  ;;  %v885_v3 = vadd.s32 %v884_v21, %v875_v19  ;;  %v982_v34 = vsel %vm981_vm5, %v980_v41, 0 }
 0x276   :  { %v984_v55 = vand.u32 31, %v982_v34  ;;  %v1881_v45 = vshrl.u32 %v982_v34, 5 }
 0x277   :  { %v911_v13 = vadd.s32 1, %v907_v54  ;;  %vm910_vm6 = vc.u32 %v885_v3, %v904_v44  ;;  %v909_v56 = vadd.s32 %v904_v44, %v885_v3 }
 0x278   :  { %v1883_v6 = vsub.s32 32, %v984_v55  ;;  %v996_v37 = vshll.u32 %v1295_v8, %v984_v55  ;;  %v999_v46 = vshll.u32 %v1296_v11, %v984_v55  ;;  %v987_v62 = vshll.u32 %v1292_v63, %v984_v55 }
 0x279   :  { %v912_v58 = vsel %vm910_vm6, %v911_v13, %v907_v54  ;;  %v990_v12 = vshll.u32 %v1293_v2, %v984_v55  ;;  %v993_v7 = vshll.u32 %v1294_v5, %v984_v55  ;;  %vm1005_vm7 = vcmp.lt.s32.totalorder %v1881_v45, 4 }
 0x27a   :  { %v913_v33 = vadd.s32 %v912_v58, %v908_v61  ;;  %v997_v1 = vshrl.u32 %v1296_v11, %v1883_v6  ;;  %v1000_v35 = vshrl.u32 %v1297_v14, %v1883_v6  ;;  %v988_v51 = vshrl.u32 %v1293_v2, %v1883_v6 }
 0x27b   :  { %v991_v17 = vshrl.u32 %v1294_v5, %v1883_v6  ;;  %v994_v20 = vshrl.u32 %v1295_v8, %v1883_v6  ;;  %vm1002_vm8 = vcmp.lt.s32.totalorder %v1881_v45, 1  ;;  %v1911_v5 = vshll.u32 %v978_v48, 8 }
 0x27c   :  { %v914_v32 = vadd.s32 536870912, %v913_v33  ;;  %v998_v22 = vor.u32 %v997_v1, %v996_v37  ;;  %v1001_v11 = vor.u32 %v1000_v35, %v999_v46  ;;  %v1902_v16 = vor.u32 %v988_v51, %v987_v62 }
 0x27d   :  { %v1906_v60 = vor.u32 %v991_v17, %v990_v12  ;;  %v995_v2 = vor.u32 %v994_v20, %v993_v7  ;;  %vm1004_vm9 = vcmp.lt.s32.totalorder %v1881_v45, 3  ;;  %vm1003_vm11 = vcmp.lt.s32.totalorder %v1881_v45, 2  ;;  %v1162_v20 = vld [vmem:[%s1989_s1] sm:$0xff] }
 0x27e   :  { %v1895_v18 = vshrl.u32 %v914_v32, 30  ;;  %v1011_v42 = vsel %vm1005_vm7, %v998_v22, 920167782  ;;  %v1015_v8 = vsel %vm1005_vm7, %v1001_v11, 1326507024  ;;  %v1019_v26 = vand.u32 65535, %v1911_v5 }
 0x27f   :  { %v1010_v40 = vsel %vm1002_vm8, %v1902_v16, %v1906_v60  ;;  %v1012_v43 = vsel %vm1004_vm9, %v995_v2, %v1011_v42  ;;  %v1014_v28 = vsel %vm1002_vm8, %v1906_v60, %v995_v2  ;;  %v1016_v10 = vsel %vm1004_vm9, %v998_v22, %v1015_v8 }
 0x280   :  { %v916_v14 = vshll.u32 %v1895_v18, 30  ;;  %v1013_v52 = vsel %vm1003_vm11, %v1010_v40, %v1012_v43  ;;  %v1017_v24 = vsel %vm1003_vm11, %v1014_v28, %v1016_v10  ;;  %v1020_v38 = vshrl.u32 %v1911_v5, 16 }
 0x281   :  { %v1043_v31 = vand.u32 65535, %v1013_v52  ;;  %v1021_v29 = vand.u32 65535, %v1017_v24  ;;  %v1022_v36 = vshrl.u32 %v1017_v24, 16  ;;  %v1044_v39 = vshrl.u32 %v1013_v52, 16 }
 0x282   :  { %v917_v25 = vsub.s32 %v913_v33, %v916_v14  ;;  %v1007_v22 = vsel %vm1005_vm7, %v995_v2, 2102212464  ;;  %v1164_v8 = vsub.f32 0.0, %v1162_v20  ;;  %vm958_vm6 = vweird.f32 %v1776_v9 }
 0x283   :  { %v1024_v59 = vmul.u32 %v1022_v36, %v1019_v26  ;;  %v1025_v50 = vmul.u32 %v1021_v29, %v1020_v38  ;;  %v1046_v19 = vmul.u32 %v1044_v39, %v1019_v26  ;;  %v1023_v21 = vmul.u32 %v1021_v29, %v1019_v26 }
 0x284   :  { %vm918_vm10 = vcmp.lt.s32.totalorder %v917_v25, 0  ;;  %v919_v27 = vsub.s32 0, %v917_v25  ;;  %v1045_v53 = vmul.u32 %v1043_v31, %v1019_v26  ;;  %v1026_v13 = vmul.u32 %v1022_v36, %v1020_v38  ;;  %1170 = vperm.xlu1 %1248, %v1164_v8  }
 0x285   :  { %v1027_v41 = vshll.u32 %v1024_v59, 16  ;;  %v1047_v57 = vmul.u32 %v1043_v31, %v1020_v38  ;;  %v1049_v34 = vshll.u32 %v1046_v19, 16  ;;  %v1048_v58 = vmul.u32 %v1044_v39, %v1020_v38 }
 0x286   :  { %v920_v30 = vsel %vm918_vm10, %v919_v27, %v917_v25  ;;  %v1029_v48 = vshll.u32 %v1025_v50, 16  ;;  %v1028_v11 = vshrl.u32 %v1024_v59, 16  ;;  %v1030_v43 = vshrl.u32 %v1025_v50, 16 }
 0x287   :  { %v921_v4 = vclz %v920_v30  ;;  %vm1031_vm13 = vc.u32 %v1023_v21, %v1027_v41  ;;  %v1033_v46 = vadd.s32 %v1027_v41, %v1023_v21  ;;  %vm1053_vm14 = vc.u32 %v1045_v53, %v1049_v34 }
 0x288   :  { %v1032_v37 = vsel %vm1031_vm13, 1, %v1289_v0  ;;  %v1051_v62 = vshll.u32 %v1047_v57, 16  ;;  %v1054_v1 = vsel %vm1053_vm14, 1, %v1289_v0  ;;  %v1055_v35 = vadd.s32 %v1049_v34, %v1045_v53 }
 0x289   :  { %v1216_v47 = vadd.s32 4294967294, %v921_v4  ;;  %v1034_v32 = vadd.s32 %v1032_v37, %v1026_v13  ;;  %vm1035_vm0 = vc.u32 %v1033_v46, %v1029_v48  ;;  %v1056_v7 = vadd.s32 %v1054_v1, %v1048_v58 }
 0x28a   :  { %v1036_v17 = vsel %vm1035_vm0, 1, %v1289_v0  ;;  %vm1057_vm1 = vc.u32 %v1055_v35, %v1051_v62  ;;  %v1050_v27 = vshrl.u32 %v1046_v19, 16  ;;  %v1008_v24 = vsel %vm1004_vm9, %v1906_v60, %v1007_v22 }
 0x28b   :  { %vm1217_vm12 = vcmp.lt.s32.totalorder %v1216_v47, 0  ;;  %v1038_v14 = vadd.s32 %v1036_v17, %v1034_v32  ;;  %v1058_v40 = vsel %vm1057_vm1, 1, %v1289_v0  ;;  %v1052_v31 = vshrl.u32 %v1047_v57, 16 }
 0x28c   :  { %v924_v54 = vsel %vm1217_vm12, 0, %v1216_v47  ;;  %v1060_v52 = vadd.s32 %v1058_v40, %v1056_v7  ;;  %v1059_v0 = vadd.s32 %v1055_v35, %v1051_v62  ;;  %v939_v47 = vsub.s32 4, %v1895_v18 }
 0x28d   :  { %v925_v61 = vsub.s32 32, %v924_v54  ;;  %v929_v55 = vsub.s32 4294967266, %v924_v54  ;;  %v926_v33 = vshll.u32 %v917_v25, %v924_v54  ;;  %v986_v25 = vshrl.u32 %v1292_v63, %v1883_v6 }
 0x28e   :  { %v1039_v28 = vadd.s32 %v1038_v14, %v1028_v11  ;;  %v1061_v63 = vadd.s32 %v1060_v52, %v1050_v27  ;;  %v940_v15 = vsel %vm817_vm3, %v939_v47, %v1895_v18  ;;  %vm971_vm12 = vcmp.le.f32.partialorder %v970_v49, 0.7853982 }
 0x28f   :  { %v927_v3 = vshrl.u32 %v909_v56, %v925_v61  ;;  %v930_v44 = vadd.s32 127, %v929_v55  ;;  %v1006_v2 = vsel %vm1002_vm8, %v986_v25, %v1902_v16  ;;  %vm1113_vm1 = vweird.f32 %v1857_v23 }
 0x290   :  { %v1040_v26 = vadd.s32 %v1039_v28, %v1030_v43  ;;  %v1009_v4 = vsel %vm1003_vm11, %v1006_v2, %v1008_v24  ;;  %v1062_v29 = vadd.s32 %v1061_v63, %v1052_v31  ;;  %vm972_vm11 = vcmp.lt.s32.totalorder %v1857_v23, 0 }
 0x291   :  { %v928_v51 = vor.u32 %v927_v3, %v926_v33  ;;  %v931_v12 = vshll.u32 %v930_v44, 23  ;;  %v1063_v38 = vmul.u32 %v1911_v5, %v1009_v4  ;;  %v942_v5 = vsel %vm1956_vm4, 0, %v940_v15 }
 0x292   :  { %vm1065_vm2 = vc.u32 %v1040_v26, %v1059_v0  ;;  %v1066_v39 = vadd.s32 1, %v1062_v29  ;;  %v959_v48 = vadd.s32 3, %v942_v5  ;;  %v1064_v14 = vadd.s32 %v1059_v0, %v1040_v26 }
 0x293   :  { %v932_v42 = vor.u32 4788187, %v931_v12  ;;  %v935_v30 = vcvt.s32.f32 %v928_v51 }
 0x294   :  { %v1067_v59 = vsel %vm1065_vm2, %v1066_v39, %v1062_v29  ;;  %v960_v62 = vand.u32 3, %v959_v48  ;;  %vm1191_vm2 = vcmask 64512  }
 0x295   :  { %v933_v10 = vand.u32 2147483647, %v932_v42  ;;  %v1068_v50 = vadd.s32 %v1067_v59, %v1063_v38 }
 0x296   :  { %vm962_vm7 = vcmp.eq.s32.totalorder %v960_v62, 0  ;;  %vm965_vm8 = vcmp.eq.s32.totalorder %v960_v62, 2  ;;  %vm961_vm10 = vcmp.lt.s32.totalorder %v960_v62, 2 }
 0x297   :  { %v936_v6 = vmul.f32 %v935_v30, %v933_v10  ;;  %v1069_v41 = vadd.s32 536870912, %v1068_v50 }
 0x299   :  { %v937_v36 = vxor.u32 2147483648, %v936_v6  ;;  %v1070_v13 = vshrl.u32 %v1069_v41, 30 }
 0x29b   :  { %v938_v60 = vsel %vm817_vm3, %v937_v36, %v936_v6  ;;  %v1071_v61 = vshll.u32 %v1070_v13, 30  ;;  %v1094_v6 = vsub.s32 4, %v1070_v13 }
 0x29c   :  { %v941_v45 = vsel %vm1956_vm4, %v1776_v9, %v938_v60  ;;  %v1163_v9 = vld [vmem:[%s1989_s1 + $0x8] sm:$0xff] }
 0x29d   :  { %v943_v56 = vmul.f32 %v941_v45, %v941_v45  ;;  %v1072_v33 = vsub.s32 %v1068_v50, %v1071_v61  ;;  %v1165_v30 = vsub.f32 0.0, %v1163_v9  ;;  %v1095_v39 = vsel %vm972_vm11, %v1094_v6, %v1070_v13 }
 0x29e   :  { %v1097_v38 = vsel %vm971_vm12, 0, %v1095_v39 }
 0x29f   :  { %v944_v19 = vmul.f32 -0.001358992, %v943_v56  ;;  %v951_v21 = vmul.f32 -0.00019511016, %v943_v56  ;;  %vm1073_vm5 = vcmp.lt.s32.totalorder %v1072_v33, 0  ;;  %v1074_v3 = vsub.s32 0, %v1072_v33  ;;  %1175 = vperm.xlu2 %1249, %v1165_v30  }
 0x2a0   :  { %v1114_v50 = vadd.s32 3, %v1097_v38 }
 0x2a1   :  { %v945_v53 = vadd.f32 0.041655596, %v944_v19  ;;  %v952_v54 = vadd.f32 0.008332121, %v951_v21  ;;  %v1075_v18 = vsel %vm1073_vm5, %v1074_v3, %v1072_v33 }
 0x2a2   :  { %v1076_v1 = vclz %v1075_v18  ;;  %v1115_v15 = vand.u32 3, %v1114_v50 }
 0x2a3   :  { %v946_v57 = vmul.f32 %v945_v53, %v943_v56  ;;  %v953_v34 = vmul.f32 %v952_v54, %v943_v56 }
 0x2a4   :  { %v1219_v12 = vadd.s32 4294967294, %v1076_v1  ;;  %vm1117_vm13 = vcmp.eq.s32.totalorder %v1115_v15, 0  ;;  %vm1120_vm14 = vcmp.eq.s32.totalorder %v1115_v15, 2  ;;  %vm1116_vm0 = vcmp.lt.s32.totalorder %v1115_v15, 2 }
 0x2a5   :  { %v947_v55 = vadd.f32 -0.4999988, %v946_v57  ;;  %v954_v58 = vadd.f32 -0.16666654, %v953_v34 }
 0x2a6   :  { %vm1220_vm9 = vcmp.lt.s32.totalorder %v1219_v12, 0 }
 0x2a7   :  { %v948_v37 = vmul.f32 %v947_v55, %v943_v56  ;;  %v955_v46 = vmul.f32 %v954_v58, %v943_v56  ;;  %v1079_v22 = vsel %vm1220_vm9, 0, %v1219_v12  ;;  %v1166_v55 = vld [vmem:[%s1998_s10] sm:$0x1] }
 0x2a8   :  { %v1080_v42 = vsub.s32 32, %v1079_v22  ;;  %v1084_v8 = vsub.s32 4294967266, %v1079_v22  ;;  %v1081_v40 = vshll.u32 %v1072_v33, %v1079_v22  ;;  %v1167_v58 = vand.u32 2147483647, %v1166_v55 }
 0x2a9   :  { %v949_v44 = vadd.f32 1.0, %v948_v37  ;;  %v956_v32 = vadd.f32 1.0, %v955_v46 }
 0x2aa   :  { %v1082_v43 = vshrl.u32 %v1064_v14, %v1080_v42  ;;  %v1085_v28 = vadd.s32 127, %v1084_v8  ;;  %v1179_v33 = vperm.slane %v1167_v58, 0 }
 0x2ab   :  { %v957_v35 = vmul.f32 %v956_v32, %v941_v45  ;;  %v966_v51 = vxor.u32 2147483648, %v949_v44 }
 0x2ac   :  { %v1083_v27 = vor.u32 %v1082_v43, %v1081_v40  ;;  %v1086_v52 = vshll.u32 %v1085_v28, 23 }
 0x2ad   :  { %v963_v17 = vxor.u32 2147483648, %v957_v35  ;;  %v967_v20 = vsel %vm965_vm8, %v966_v51, %v957_v35 }
 0x2ae   :  { %v1087_v10 = vor.u32 4788187, %v1086_v52  ;;  %v1090_v24 = vcvt.s32.f32 %v1083_v27 }
 0x2af   :  { %v964_v7 = vsel %vm962_vm7, %v949_v44, %v963_v17 }
 0x2b0   :  { %v968_v11 = vsel %vm961_vm10, %v964_v7, %v967_v20  ;;  %v1088_v2 = vand.u32 2147483647, %v1087_v10 }
 0x2b1   :  { %v969_v25 = vsel %vm958_vm6, nan, %v968_v11 }
 0x2b2   :  { %1221 = vmatmul.msk.f32.vlgmr.msra.gmra.mxu2 %vm430_vm15, %v969_v25  ;;  %v1091_v26 = vmul.f32 %v1090_v24, %v1088_v2 }
 0x2b4   :  { %v1092_v31 = vxor.u32 2147483648, %v1091_v26 }
 0x2b6   :  { %v1093_v63 = vsel %vm972_vm11, %v1092_v31, %v1091_v26 }
 0x2b7   :  { %v1096_v0 = vsel %vm971_vm12, %v1857_v23, %v1093_v63 }
 0x2b8   :  { %v1098_v4 = vmul.f32 %v1096_v0, %v1096_v0 }
 0x2ba   :  { %v1099_v29 = vmul.f32 -0.001358992, %v1098_v4  ;;  %v1106_v36 = vmul.f32 -0.00019511016, %v1098_v4 }
 0x2bc   :  { %v1100_v16 = vadd.f32 0.041655596, %v1099_v29  ;;  %v1107_v60 = vadd.f32 0.008332121, %v1106_v36 }
 0x2be   :  { %v1101_v47 = vmul.f32 %v1100_v16, %v1098_v4  ;;  %v1108_v45 = vmul.f32 %v1107_v60, %v1098_v4 }
 0x2c0   :  { %v1102_v59 = vadd.f32 -0.4999988, %v1101_v47  ;;  %v1109_v56 = vadd.f32 -0.16666654, %v1108_v45 }
 0x2c2   :  { %v1103_v19 = vmul.f32 %v1102_v59, %v1098_v4  ;;  %v1110_v21 = vmul.f32 %v1109_v56, %v1098_v4 }
 0x2c4   :  { %v1104_v41 = vadd.f32 1.0, %v1103_v19  ;;  %v1111_v49 = vadd.f32 1.0, %v1110_v21 }
 0x2c6   :  { %v1112_v53 = vmul.f32 %v1111_v49, %v1096_v0  ;;  %v1121_v54 = vxor.u32 2147483648, %v1104_v41 }
 0x2c8   :  { %v1118_v5 = vxor.u32 2147483648, %v1112_v53  ;;  %v1122_v57 = vsel %vm1120_vm14, %v1121_v54, %v1112_v53 }
 0x2ca   :  { %v1119_v13 = vsel %vm1117_vm13, %v1104_v41, %v1118_v5 }
 0x2cb   :  { %v1123_v34 = vsel %vm1116_vm0, %v1119_v13, %v1122_v57 }
 0x2cc   :  { %v1124_v61 = vsel %vm1113_vm1, nan, %v1123_v34 }
 0x2cd   :  { %1222 = vmatmul.msk.f32.gmra.mxu2 %vm430_vm15, %v1124_v61 }
 0x2f6   :  { %v1171_v48 = vpop.permute.xlu1 %1170 }
 0x2f7   :  { %v1181_v37 = vmul.f32 %v1179_v33, %v1171_v48 }
 0x2f9   :  { %v1183_v46 = vmul.f32 1.442695, %v1181_v37  ;;  %v1176_v23 = vpop.permute.xlu2 %1175 }
 0x2fa   :  { %v1182_v62 = vmul.f32 %v1179_v33, %v1176_v23 }
 0x2fb   :  { %1255 = vpow2.f32 %v1183_v46 }
 0x2fc   :  { %v1185_v1 = vmul.f32 1.442695, %v1182_v62 }
 0x2fe   :  { %1257 = vpow2.f32 %v1185_v1 }
 0x301   :  { %v1256_v3 = vpop.eup %1255 }
 0x302   :  { %v1187_v44 = vadd.f32 0.05, %v1256_v3 }
 0x304   :  { %v1258_v35 = vpop.eup %1257 }
 0x305   :  { %v1188_v51 = vadd.f32 0.05, %v1258_v35 }
 0x335   :  { %v1156_v32 = vpop.f32.mrf.mxu2 }
 0x336   :  { %v1189_v18 = vmul.f32 %v1187_v44, %v1156_v32 }
 0x338   :  { %1192 = vst.msk [vmem:[%s1999_s11] sm:$0xff] %vm1191_vm2, %v1189_v18 }
 0x350   :  { %v1159_v12 = vpop.f32.mrf.mxu2 }
 0x351   :  { %v1190_v17 = vmul.f32 %v1188_v51, %v1159_v12 }
 0x353   :  { %1193 = vst.msk [vmem:[%s1999_s11 + $0x8] sm:$0xff] %vm1191_vm2, %v1190_v17 }
 0x354   :  { %1198 = vsyncpa [#allocation3], 1 }

// kernel: hyena_forward.3
= control target key start
LH: loop header
LB: loop body
LE: loop exit
PB: predicated region body
PF: predicated region fallthrough
CT: control target
= control target key end

     0   :  { %s876_s30 = smov 0   ;;  %s1043_s0 = inlined_call_operand.vmem [shape: f32[2,16,8], index: 0, kind: input, shape index: {}]   ;;  %s1044_s1 = inlined_call_operand.vmem [shape: bf16[8,24], index: 1, kind: input, shape index: {}]   ;;  %s1045_s2 = inlined_call_operand.vmem [shape: f32[1,24], index: 2, kind: input, shape index: {}]   ;;  %s1046_s3 = inlined_call_operand.vmem [shape: f32[3,24], index: 3, kind: input, shape index: {}]   ;;  %s1047_s4 = inlined_call_operand.vmem [shape: f32[1,24], index: 4, kind: input, shape index: {}]   ;;  %s1048_s5 = inlined_call_operand.vmem [shape: f32[16,8], index: 5, kind: input, shape index: {}]   ;;  %s1049_s6 = inlined_call_operand.vmem [shape: f32[1,8], index: 6, kind: input, shape index: {}]   ;;  %s1050_s7 = inlined_call_operand.vmem [shape: bf16[8,8], index: 7, kind: input, shape index: {}]   ;;  %s1051_s8 = inlined_call_operand.vmem [shape: f32[1,8], index: 8, kind: input, shape index: {}]   ;;  %s1052_s9 = inlined_call_operand.vmem [shape: f32[2,16,8], index: 9, kind: output, shape index: {}]  }
   0x1 LB: > { %s767_s10 = sadd.s32 4294967295, %s820_s30   ;;  %p771_p0 = scmp.ge.s32.totalorder %s820_s30, 1  ;;  %s820_s30 = sphi %s876_s30, %s19_s30  }
   0x2   : > { %p287_p1 = scmp.lt.s32.totalorder %s820_s30, 3 }
   0x4   : > { %p288_p2 = pnand %p771_p0, %p287_p1 }
   0x5   : > { %p323_p3 = scmp.lt.s32.totalorder (!%p288_p2), %s767_s10, 1  ;;  %s823_s21 = smov (!%p288_p2), 16  }
   0x6   : > { %291 = sbr.rel (%p288_p2) target bundleno = 849 (0x351), region = 56  ;;  %s824_s26 = smov (!%p288_p2), 8  }
   0x7   : > { %s825_s12 = smov (!%p288_p2), 112  }
   0xb   : > { %v337_v0 = vld [vmem:[%s1044_s1] sm:$0xf]  ;;  %vm346_vm0 = vcmask 1043456   ;;  %vm364_vm1 = vcmask 189440   ;;  %s1054_s10 = smov (!%p323_p3, %s767_s10), 1  ;;  %vm342_vm2 = vcmask 64512  }
   0xc   : > { %v348_v1 = vsel %vm346_vm0, %v337_v0, 0  ;;  %v822_v2 = vmov 0.0   ;;  %s780_s13 = sshll.u32 %s1054_s10, 4  ;;  %v796_v6 = vld [vmem:[%s1049_s6] ss:$0 sm:$0xff]  ;;  %vm366_vm3 = vcmask 195584  }
   0xd   : > { %357 = vmatpush.bf16.msra.mxu0 %v348_v1  ;;  %365 = vst.msk [vmem:[#allocation2] sm:$0x3] %vm364_vm1, %v822_v2  ;;  %s327_s16 = scalar_lea.vmem %s1043_s0, %s780_s13  ;;  %v794_v7 = vld [vmem:[%s1045_s2] ss:$0 sm:$0xff]  ;;  %420 = vrot.lane.b32.xlu2 %v796_v6, %s823_s21  ;;  %v797_v36 = vld [vmem:[%s1048_s5 + $0x9] ss:$0 sm:$0xff]  ;;  %s332_s15 = scalar_lea.vmem %s1052_s9, %s780_s13 }
   0xe   : > { %405 = vst.msk [vmem:[#allocation3] sm:$0xff] %vm342_vm2, %v822_v2  ;;  %v334_v3 = vld [vmem:[%s327_s16] sm:$0xff]  ;;  %v335_v4 = vld [vmem:[%s327_s16 + $0x8] sm:$0xff] }
   0xf   : > { %406 = vst.msk [vmem:[#allocation3 + $0x8] sm:$0xff] %vm342_vm2, %v822_v2  ;;  %v336_v5 = vpack.c.bf16 %v335_v4, %v334_v3  ;;  %v369_v10 = vld [vmem:[%s1046_s3] sm:$0x7]  ;;  %v924_v38 = vld [vmem:[%s1048_s5 + $0x8] ss:$0 sm:$0xff] }
  0x10   : > { %v372_v11 = vperm.slane %v369_v10, 2  ;;  %v377_v12 = vperm.slane %v369_v10, 1  ;;  %v384_v15 = vperm.slane %v369_v10, 0  ;;  %v795_v23 = vld [vmem:[%s1047_s4] ss:$0 sm:$0xff] }
  0x11   : > { %776 = vmatmul.msk.bf16.vlgmr.msra.gmra.mxu0 %vm342_vm2, %v336_v5  ;;  %v942_v45 = vld [vmem:[%s1048_s5 + $0xc] ss:$0 sm:$0xff]  ;;  %v800_v46 = vld [vmem:[%s1048_s5 + $0xb] ss:$0 sm:$0xff]  ;;  %v801_v47 = vld [vmem:[%s1048_s5 + $0xa] ss:$0 sm:$0xff] }
  0x12   : > { %v802_v55 = vld [vmem:[%s1048_s5 + $0x2] ss:$0 sm:$0xff]  ;;  %v803_v56 = vld [vmem:[%s1048_s5] ss:$0 sm:$0xff]  ;;  %v804_v57 = vld [vmem:[%s1048_s5 + $0x1] ss:$0 sm:$0xff] }
  0x13   : > { %v805_v1 = vld [vmem:[%s1048_s5 + $0x5] ss:$0 sm:$0xff]  ;;  %v806_v2 = vld [vmem:[%s1048_s5 + $0x3] ss:$0 sm:$0xff]  ;;  %v807_v5 = vld [vmem:[%s1048_s5 + $0x4] ss:$0 sm:$0xff] }
  0x14   : > { %v808_v10 = vld [vmem:[%s1048_s5 + $0x6] ss:$0 sm:$0xff] }
  0x16   : > { %v568_v35 = vld [vmem:[#allocation3 + $0x7] sm:$0xff] }
  0x17   : > { %v553_v37 = vld [vmem:[#allocation3 + $0x8] sm:$0xff]  ;;  %v571_v39 = vmul.f32 %v797_v36, %v568_v35 }
  0x18   : > { %v556_v40 = vmul.f32 %v924_v38, %v553_v37  ;;  %v613_v48 = vld [vmem:[#allocation3 + $0x4] sm:$0xff] }
  0x19   : > { %575 = vrot.lane.b32.xlu2 %v571_v39, %s823_s21  ;;  %v598_v49 = vld [vmem:[#allocation3 + $0x5] sm:$0xff]  ;;  %v616_v51 = vmul.f32 %v942_v45, %v613_v48 }
  0x1a   : > { %v583_v50 = vld [vmem:[#allocation3 + $0x6] sm:$0xff]  ;;  %v601_v52 = vmul.f32 %v800_v46, %v598_v49  ;;  %v812_v49 = vld [vmem:[%s1048_s5 + $0xf] ss:$0 sm:$0xff] }
  0x1b   : > { %v586_v53 = vmul.f32 %v801_v47, %v583_v50  ;;  %v643_v39 = vld [vmem:[#allocation3 + $0x2] sm:$0xff] }
  0x1c   : > { %v658_v48 = vld [vmem:[#allocation3 + $0x1] sm:$0xff] }
  0x1d   : > { %v661_v50 = vmul.f32 %v812_v49, %v658_v48 }
  0x21   : > { %620 = vrot.lane.b32.xlu2 %v616_v51, %s823_s21 }
  0x8e   : > { %v359_v8 = vpop.f32.mrf.mxu0 }
  0x8f   : > { %v360_v9 = vadd.f32 %v794_v7, %v359_v8 }
  0x91   : > { %367 = vst.msk [vmem:[#allocation2 + $0x2] sm:$0xff] %vm366_vm3, %v360_v9 }
  0x96   : > { %v361_v13 = vpop.f32.mrf.mxu0 }
  0x97   : > { %v362_v14 = vadd.f32 %v794_v7, %v361_v13 }
  0x98   : > { %v370_v16 = vld [vmem:[#allocation2 + $0x2] sm:$0xff] }
  0x99   : > { %v375_v17 = vld [vmem:[#allocation2 + $0x1] sm:$0xff]  ;;  %368 = vst.msk [vmem:[#allocation2 + $0xa] sm:$0xff] %vm366_vm3, %v362_v14  ;;  %v373_v19 = vmul.f32 %v372_v11, %v370_v16 }
  0x9a   : > { %v382_v18 = vld [vmem:[#allocation2] sm:$0xff]  ;;  %v378_v20 = vmul.f32 %v377_v12, %v375_v17 }
  0x9b   : > { %v385_v22 = vmul.f32 %v384_v15, %v382_v18 }
  0x9c   : > { %v380_v21 = vadd.f32 %v378_v20, %v373_v19 }
  0x9e   : > { %v387_v24 = vadd.f32 %v385_v22, %v380_v21 }
  0xa0   : > { %v912_v25 = vadd.f32 %v795_v23, %v387_v24  ;;  %v371_v26 = vld [vmem:[#allocation2 + $0xa] sm:$0xff] }
  0xa1   : > { %v376_v27 = vld [vmem:[#allocation2 + $0x9] sm:$0xff]  ;;  %v374_v29 = vmul.f32 %v372_v11, %v371_v26 }
  0xa2   : > { %v383_v28 = vld [vmem:[#allocation2 + $0x8] sm:$0xff]  ;;  %397 = vrot.lane.b32.xlu0 %v912_v25, %s824_s26  ;;  %v379_v30 = vmul.f32 %v377_v12, %v376_v27  ;;  %v809_v12 = vld [vmem:[%s1048_s5 + $0x7] ss:$0 sm:$0xff] }
  0xa3   : > { %v386_v32 = vmul.f32 %v384_v15, %v383_v28 }
  0xa4   : > { %v381_v31 = vadd.f32 %v379_v30, %v374_v29 }
  0xa6   : > { %v388_v33 = vadd.f32 %v386_v32, %v381_v31 }
  0xa8   : > { %v915_v34 = vadd.f32 %v795_v23, %v388_v33 }
  0xaa   : > { %399 = vrot.lane.b32.xlu0 %v915_v34, %s824_s26 }
  0xb2   : > { %560 = vrot.lane.b32.xlu0 %v556_v40, %s823_s21  ;;  %v628_v40 = vld [vmem:[#allocation3 + $0x3] sm:$0xff] }
  0xba   : > { %605 = vrot.lane.b32.xlu0 %v601_v52, %s823_s21 }
 0x114   : > { %v398_v41 = vpop.permute.xlu0 %397 }
 0x115   : > { %v930_v42 = vmul.f32 %v398_v41, %v912_v25  ;;  %v810_v41 = vld [vmem:[%s1048_s5 + $0xd] ss:$0 sm:$0xff] }
 0x117   : > { %409 = vrot.lane.b32.xlu1 %v930_v42, %s825_s12 }
 0x11c   : > { %v400_v43 = vpop.permute.xlu0 %399 }
 0x11d   : > { %v935_v44 = vmul.f32 %v400_v43, %v915_v34  ;;  %v811_v43 = vld [vmem:[%s1048_s5 + $0xe] ss:$0 sm:$0xff] }
 0x11f   : > { %411 = vrot.lane.b32.xlu1 %v935_v44, %s825_s12 }
 0x127   : > { %590 = vrot.lane.b32.xlu1 %v586_v53, %s823_s21  ;;  %v421_v53 = vpop.permute.xlu2 %420 }
 0x189   : > { %v410_v54 = vpop.permute.xlu1 %409 }
 0x18a   : > { %415 = vst.msk [vmem:[#allocation3 + $0x10] sm:$0xff] %vm342_vm2, %v410_v54  ;;  %v576_v54 = vpop.permute.xlu2 %575 }
 0x191   : > { %v412_v58 = vpop.permute.xlu1 %411  ;;  %v457_v59 = vld [vmem:[#allocation3 + $0xe] sm:$0xff] }
 0x192   : > { %v425_v60 = vld [vmem:[#allocation3 + $0x10] sm:$0xff]  ;;  %416 = vst.msk [vmem:[#allocation3 + $0x18] sm:$0xff] %vm342_vm2, %v412_v58  ;;  %v461_v62 = vmul.f32 %v802_v55, %v457_v59  ;;  %v587_v18 = vmul.f32 %v801_v47, %v457_v59  ;;  %v631_v47 = vmul.f32 %v810_v41, %v628_v40 }
 0x193   : > { %v441_v61 = vld [vmem:[#allocation3 + $0xf] sm:$0xff]  ;;  %v429_v63 = vmul.f32 %v803_v56, %v425_v60  ;;  %v557_v20 = vmul.f32 %v924_v38, %v425_v60 }
 0x194   : > { %v445_v0 = vmul.f32 %v804_v57, %v441_v61  ;;  %465 = vrot.lane.b32.xlu0 %v461_v62, %s823_s21  ;;  %v505_v3 = vld [vmem:[#allocation3 + $0xb] sm:$0xff]  ;;  %v572_v14 = vmul.f32 %v797_v36, %v441_v61  ;;  %v423_v61 = vmul.f32 %v421_v53, %v930_v42 }
 0x195   : > { %433 = vrot.lane.b32.xlu2 %v429_v63, %s823_s21  ;;  %v473_v4 = vld [vmem:[#allocation3 + $0xd] sm:$0xff]  ;;  %v509_v7 = vmul.f32 %v805_v1, %v505_v3 }
 0x196   : > { %449 = vrot.lane.b32.xlu1 %v445_v0, %s823_s21  ;;  %v489_v6 = vld [vmem:[#allocation3 + $0xc] sm:$0xff]  ;;  %v477_v8 = vmul.f32 %v806_v2, %v473_v4  ;;  %v602_v26 = vmul.f32 %v800_v46, %v473_v4  ;;  %v646_v46 = vmul.f32 %v811_v43, %v643_v39 }
 0x197   : > { %v493_v9 = vmul.f32 %v807_v5, %v489_v6  ;;  %v521_v11 = vld [vmem:[#allocation3 + $0xa] sm:$0xff]  ;;  %v617_v37 = vmul.f32 %v942_v45, %v489_v6  ;;  %v632_v45 = vmul.f32 %v810_v41, %v505_v3 }
 0x198   : > { %v537_v13 = vld [vmem:[#allocation3 + $0x9] sm:$0xff]  ;;  %v525_v15 = vmul.f32 %v808_v10, %v521_v11  ;;  %v647_v52 = vmul.f32 %v811_v43, %v521_v11 }
 0x199   : > { %v541_v16 = vmul.f32 %v809_v12, %v537_v13  ;;  %v426_v17 = vld [vmem:[#allocation3 + $0x18] sm:$0xff]  ;;  %v662_v51 = vmul.f32 %v812_v49, %v537_v13  ;;  %v591_v59 = vpop.permute.xlu1 %590 }
 0x19a   : > { %v430_v19 = vmul.f32 %v803_v56, %v426_v17  ;;  %v442_v21 = vld [vmem:[#allocation3 + $0x17] sm:$0xff]  ;;  %v561_v56 = vpop.permute.xlu0 %560 }
 0x19b   : > { %v474_v22 = vld [vmem:[#allocation3 + $0x15] sm:$0xff]  ;;  %v446_v23 = vmul.f32 %v804_v57, %v442_v21 }
 0x19c   : > { %513 = vrot.lane.b32.xlu0 %v509_v7, %s823_s21  ;;  %v478_v24 = vmul.f32 %v806_v2, %v474_v22  ;;  %v490_v27 = vld [vmem:[#allocation3 + $0x14] sm:$0xff]  ;;  %v424_v22 = vmul.f32 %v421_v53, %v935_v44 }
 0x19d   : > { %481 = vrot.lane.b32.xlu2 %v477_v8, %s823_s21  ;;  %v522_v28 = vld [vmem:[#allocation3 + $0x12] sm:$0xff]  ;;  %v494_v30 = vmul.f32 %v807_v5, %v490_v27 }
 0x19e   : > { %497 = vrot.lane.b32.xlu1 %v493_v9, %s823_s21  ;;  %v458_v29 = vld [vmem:[#allocation3 + $0x16] sm:$0xff]  ;;  %v526_v31 = vmul.f32 %v808_v10, %v522_v28 }
 0x19f   : > { %v462_v32 = vmul.f32 %v802_v55, %v458_v29  ;;  %v538_v33 = vld [vmem:[#allocation3 + $0x11] sm:$0xff]  ;;  %v621_v55 = vpop.permute.xlu2 %620 }
 0x1a0   : > { %v506_v35 = vld [vmem:[#allocation3 + $0x13] sm:$0xff]  ;;  %v542_v36 = vmul.f32 %v809_v12, %v538_v33 }
 0x1a1   : > { %v510_v38 = vmul.f32 %v805_v1, %v506_v35 }
 0x1a2   : > { %v606_v58 = vpop.permute.xlu0 %605 }
 0x1a4   : > { %577 = vrot.lane.b32.xlu0 %v572_v14, %s823_s21 }
 0x1a5   : > { %529 = vrot.lane.b32.xlu2 %v525_v15, %s823_s21 }
 0x1a6   : > { %545 = vrot.lane.b32.xlu1 %v541_v16, %s823_s21 }
 0x1ac   : > { %435 = vrot.lane.b32.xlu0 %v430_v19, %s823_s21 }
 0x1ad   : > { %592 = vrot.lane.b32.xlu2 %v587_v18, %s823_s21 }
 0x1ae   : > { %562 = vrot.lane.b32.xlu1 %v557_v20, %s823_s21 }
 0x1b4   : > { %483 = vrot.lane.b32.xlu0 %v478_v24, %s823_s21 }
 0x1b5   : > { %451 = vrot.lane.b32.xlu2 %v446_v23, %s823_s21 }
 0x1b6   : > { %607 = vrot.lane.b32.xlu1 %v602_v26, %s823_s21 }
 0x1bc   : > { %531 = vrot.lane.b32.xlu0 %v526_v31, %s823_s21  ;;  %v682_v31 = vld [vmem:[%s1050_s7] sm:$0xf] }
 0x1bd   : > { %499 = vrot.lane.b32.xlu2 %v494_v30, %s823_s21 }
 0x1be   : > { %467 = vrot.lane.b32.xlu1 %v462_v32, %s823_s21  ;;  %v694_v32 = vsel %vm346_vm0, %v682_v31, 0 }
 0x1bf   : > { %703 = vmatpush.bf16.msra.mxu1 %v694_v32 }
 0x1c4   : > { %622 = vrot.lane.b32.xlu0 %v617_v37, %s823_s21 }
 0x1c5   : > { %547 = vrot.lane.b32.xlu2 %v542_v36, %s823_s21 }
 0x1c6   : > { %515 = vrot.lane.b32.xlu1 %v510_v38, %s823_s21 }
 0x1cc   : > { %650 = vrot.lane.b32.xlu0 %v646_v46, %s823_s21 }
 0x1cd   : > { %637 = vrot.lane.b32.xlu2 %v632_v45, %s823_s21 }
 0x1ce   : > { %635 = vrot.lane.b32.xlu1 %v631_v47, %s823_s21 }
 0x1d4   : > { %667 = vrot.lane.b32.xlu0 %v662_v51, %s823_s21 }
 0x1d5   : > { %665 = vrot.lane.b32.xlu2 %v661_v50, %s823_s21 }
 0x1d6   : > { %652 = vrot.lane.b32.xlu1 %v647_v52, %s823_s21 }
 0x1dd   : > { %675 = vrot.lane.b32.xlu2 %v915_v34, %s823_s21 }
 0x1de   : > { %673 = vrot.lane.b32.xlu1 %v912_v25, %s823_s21 }
 0x1ef   : > { %v434_v57 = vpop.permute.xlu2 %433 }
 0x1f0   : > { %v439_v62 = vadd.f32 %v434_v57, %v423_v61 }
 0x1f7   : > { %v482_v60 = vpop.permute.xlu2 %481 }
 0x1ff   : > { %v530_v2 = vpop.permute.xlu2 %529 }
 0x206   : > { %v466_v63 = vpop.permute.xlu0 %465 }
 0x207   : > { %v593_v7 = vpop.permute.xlu2 %592 }
 0x208   : > { %v450_v0 = vpop.permute.xlu1 %449 }
 0x209   : > { %v455_v1 = vadd.f32 %v450_v0, %v439_v62  ;;  %v813_v0 = vld [vmem:[%s1051_s8] ss:$0 sm:$0xff] }
 0x20b   : > { %v471_v3 = vadd.f32 %v466_v63, %v455_v1 }
 0x20d   : > { %v487_v4 = vadd.f32 %v482_v60, %v471_v3 }
 0x20e   : > { %v514_v34 = vpop.permute.xlu0 %513 }
 0x20f   : > { %v452_v14 = vpop.permute.xlu2 %451 }
 0x210   : > { %v498_v5 = vpop.permute.xlu1 %497 }
 0x211   : > { %v503_v6 = vadd.f32 %v498_v5, %v487_v4 }
 0x213   : > { %v519_v25 = vadd.f32 %v514_v34, %v503_v6 }
 0x215   : > { %v535_v8 = vadd.f32 %v530_v2, %v519_v25 }
 0x216   : > { %v578_v9 = vpop.permute.xlu0 %577 }
 0x217   : > { %v500_v20 = vpop.permute.xlu2 %499 }
 0x218   : > { %v546_v10 = vpop.permute.xlu1 %545 }
 0x219   : > { %v551_v11 = vadd.f32 %v546_v10, %v535_v8 }
 0x21b   : > { %v566_v12 = vadd.f32 %v561_v56, %v551_v11 }
 0x21d   : > { %v581_v13 = vadd.f32 %v576_v54, %v566_v12 }
 0x21e   : > { %v436_v42 = vpop.permute.xlu0 %435 }
 0x21f   : > { %v596_v15 = vadd.f32 %v591_v59, %v581_v13  ;;  %v440_v23 = vadd.f32 %v436_v42, %v424_v22  ;;  %v548_v29 = vpop.permute.xlu2 %547 }
 0x220   : > { %v563_v16 = vpop.permute.xlu1 %562 }
 0x221   : > { %v611_v17 = vadd.f32 %v606_v58, %v596_v15  ;;  %v456_v24 = vadd.f32 %v452_v14, %v440_v23 }
 0x223   : > { %v626_v18 = vadd.f32 %v621_v55, %v611_v17 }
 0x226   : > { %v484_v19 = vpop.permute.xlu0 %483 }
 0x227   : > { %v638_v44 = vpop.permute.xlu2 %637 }
 0x228   : > { %v608_v21 = vpop.permute.xlu1 %607 }
 0x22e   : > { %v532_v26 = vpop.permute.xlu0 %531 }
 0x22f   : > { %v666_v48 = vpop.permute.xlu2 %665 }
 0x230   : > { %v468_v27 = vpop.permute.xlu1 %467 }
 0x231   : > { %v472_v28 = vadd.f32 %v468_v27, %v456_v24 }
 0x233   : > { %v488_v30 = vadd.f32 %v484_v19, %v472_v28 }
 0x235   : > { %v504_v33 = vadd.f32 %v500_v20, %v488_v30 }
 0x236   : > { %v623_v36 = vpop.permute.xlu0 %622 }
 0x237   : > { %v676_v58 = vpop.permute.xlu2 %675 }
 0x238   : > { %v516_v35 = vpop.permute.xlu1 %515 }
 0x239   : > { %v520_v37 = vadd.f32 %v516_v35, %v504_v33 }
 0x23b   : > { %v536_v38 = vadd.f32 %v532_v26, %v520_v37 }
 0x23d   : > { %v552_v39 = vadd.f32 %v548_v29, %v536_v38 }
 0x23e   : > { %v651_v46 = vpop.permute.xlu0 %650 }
 0x23f   : > { %v567_v40 = vadd.f32 %v563_v16, %v552_v39 }
 0x240   : > { %v636_v41 = vpop.permute.xlu1 %635 }
 0x241   : > { %v582_v43 = vadd.f32 %v578_v9, %v567_v40  ;;  %v641_v50 = vadd.f32 %v636_v41, %v626_v18 }
 0x243   : > { %v597_v47 = vadd.f32 %v593_v7, %v582_v43  ;;  %v656_v53 = vadd.f32 %v651_v46, %v641_v50 }
 0x245   : > { %v612_v45 = vadd.f32 %v608_v21, %v597_v47  ;;  %v671_v57 = vadd.f32 %v666_v48, %v656_v53 }
 0x246   : > { %v668_v55 = vpop.permute.xlu0 %667 }
 0x247   : > { %v627_v49 = vadd.f32 %v623_v36, %v612_v45 }
 0x248   : > { %v653_v51 = vpop.permute.xlu1 %652 }
 0x249   : > { %v642_v52 = vadd.f32 %v638_v44, %v627_v49 }
 0x24b   : > { %v657_v54 = vadd.f32 %v653_v51, %v642_v52 }
 0x24d   : > { %v672_v56 = vadd.f32 %v668_v55, %v657_v54 }
 0x24f   : > { %v680_v60 = vmul.f32 %v676_v58, %v672_v56 }
 0x250   : > { %v674_v59 = vpop.permute.xlu1 %673 }
 0x251   : > { %v679_v61 = vmul.f32 %v674_v59, %v671_v57 }
 0x253   : > { %v681_v62 = vpack.c.bf16 %v680_v60, %v679_v61 }
 0x255   : > { %688 = vrot.lane.b32.xlu0 %v681_v62, %s825_s12 }
 0x2c7   : > { %v689_v63 = vpop.permute.xlu0 %688 }
 0x2c8   : > { %777 = vmatmul.msk.bf16.vlgmr.msra.gmra.mxu1 %vm342_vm2, %v689_v63 }
 0x345   : > { %v705_v1 = vpop.f32.mrf.mxu1 }
 0x346   : > { %v706_v2 = vadd.f32 %v813_v0, %v705_v1 }
 0x348   : > { %710 = vst.msk [vmem:[%s332_s15] sm:$0xff] %vm342_vm2, %v706_v2 }
 0x34d   : > { %v707_v3 = vpop.f32.mrf.mxu1 }
 0x34e   : > { %v708_v4 = vadd.f32 %v813_v0, %v707_v3 }
 0x350   : > { %711 = vst.msk [vmem:[%s332_s15 + $0x8] sm:$0xff] %vm342_vm2, %v708_v4 }
 0x351 PF: > { %s19_s30 = sadd.s32 1, %s820_s30  }
 0x352   : > { %p16_p4 = scmp.ge.s32.totalorder %s19_s30, 4  }
 0x354   :  { %18 = sbr.rel (!%p16_p4) target bundleno = 1 (0x1), region = 86 }

</bundles_post_ra>
